<compile_context>
chip_gen: v5e
topology: v5e:2x2
jax: 0.10.0
libtpu: 0.0.40
codegen_flags: <defaults>
</compile_context>

<pallas_src>
import functools
import math

import jax
import jax.numpy as jnp
import numpy as np
from jax import lax
from jax.experimental import pallas as pl
from jax.experimental.pallas import tpu as pltpu


# ------------------------------ shared math ---------------------------------
def _layernorm(x, gamma, beta, eps=1e-5):
    mu = jnp.mean(x, axis=-1, keepdims=True)
    var = jnp.mean((x - mu) ** 2, axis=-1, keepdims=True)
    return (x - mu) * lax.rsqrt(var + eps) * gamma + beta


def _gelu_tanh(x):
    # TODO(synk): PyTorch nn.GELU default is exact erf; tanh approximation used.
    return 0.5 * x * (1.0 + jnp.tanh(0.7978845608028654 * (x + 0.044715 * x * x * x)))


def _round_up(x, m):
    return (x + m - 1) // m * m


# ------------------------------ Pallas kernel -------------------------------
def geno2pheno_kernel(
    q_ref, k_ref, v_ref,
    wq_ref, wk_ref, wv_ref, wo_ref, w1_ref, w2_ref,
    r_ref, drvt_ref, rv_ref, rvt_ref, vecs_ref,
    o_ref,
    *, bt, s, h, ff, heads, two_head_dim):
    f32 = jnp.float32
    bf16 = jnp.bfloat16
    nh2 = 2 * heads

    q = q_ref[...]                      # (BT, H)    bf16
    k2 = k_ref[...]                     # (BT*S, H)  bf16 (pre-flattened)
    v2 = v_ref[...]                     # (BT*S, H)  bf16

    # ----- projections: bf16 operands, f32 accumulation on the MXU ----------
    qh = jnp.dot(q, wq_ref[...], preferred_element_type=f32)               # (BT, H)
    kh = jnp.dot(k2, wk_ref[...], preferred_element_type=f32).reshape(bt, s, h)
    vh = jnp.dot(v2, wv_ref[...], preferred_element_type=f32).reshape(bt, s, h)

    # ----- per-sub-head scores: R sums each head_dim block (scaled hd^-0.5) -
    qk = kh * qh[:, None, :]                                                # (BT,S,H)
    scores = jnp.dot(qk.reshape(bt * s, h), r_ref[...],
                     preferred_element_type=f32).reshape(bt, s, nh2)        # (BT,S,2h)

    # softmax over the source axis (axis=1 -> sublane/XLU reduction)
    m = jnp.max(scores, axis=1, keepdims=True)
    e = jnp.exp(scores - m)
    w = e / jnp.sum(e, axis=1, keepdims=True)                               # (BT,S,2h)

    # fused differential combine + head->hidden broadcast (DRvT = D @ Rv.T)
    wexp = jnp.dot(w.reshape(bt * s, nh2), drvt_ref[...],
                   preferred_element_type=f32).reshape(bt, s, h)            # (BT,S,H)
    attn = jnp.sum(wexp * vh, axis=1)                                       # (BT,H)

    # per-head RMSNorm (subln); subw row already includes *(1 - lambda_init)
    ms = jnp.dot(attn * attn, rv_ref[...], preferred_element_type=f32) / two_head_dim
    inv_exp = jnp.dot(lax.rsqrt(ms + 1e-5), rvt_ref[...], preferred_element_type=f32)

    subw = vecs_ref[0:1, :h]
    g1, be1 = vecs_ref[1:2, :h], vecs_ref[2:3, :h]
    b1 = vecs_ref[3:4, :ff]
    b2 = vecs_ref[4:5, :h]
    g2, be2 = vecs_ref[5:6, :h], vecs_ref[6:7, :h]

    attn = attn * inv_exp * subw                                            # (BT,H)

    # ----- output projection, squeeze(1) already done (q was (BT,H)) --------
    x = jnp.dot(attn.astype(bf16), wo_ref[...], preferred_element_type=f32)
    x = _layernorm(x, g1, be1)

    # ----- PositionWiseFeedForward (dropout = identity in eval) -------------
    h1 = jnp.dot(x.astype(bf16), w1_ref[...], preferred_element_type=f32) + b1
    h1 = _gelu_tanh(h1)
    y = jnp.dot(h1.astype(bf16), w2_ref[...], preferred_element_type=f32) + b2

    # ----- outer LayerNorm; final dropout = identity (eval mode) ------------
    # TODO(synk): stochastic nn.Dropout (train mode) not implemented; eval-mode identity.
    y = _layernorm(y, g2, be2)

    o_ref[...] = y.astype(o_ref.dtype)


# ------------------------------ parameters ----------------------------------
def init_params(key, hidden, heads, ff):
    hd = hidden // heads // 2
    ks = jax.random.split(key, 16)

    def w(k_, shape, scale=0.1):
        return (scale * jax.random.normal(k_, shape)).astype(jnp.float32)

    p = {}
    p["wq"] = w(ks[0], (hidden, hidden))
    p["wk"] = w(ks[1], (hidden, hidden))
    p["wv"] = w(ks[2], (hidden, hidden))
    p["wo"] = w(ks[3], (hidden, hidden))
    p["lq1"] = w(ks[4], (hd,))
    p["lk1"] = w(ks[5], (hd,))
    p["lq2"] = w(ks[6], (hd,))
    p["lk2"] = w(ks[7], (hd,))
    p["subln_w"] = jnp.ones((2 * hd,), jnp.float32)
    p["g1"] = 1.0 + w(ks[8], (hidden,))
    p["be1"] = w(ks[9], (hidden,))
    p["w1"] = w(ks[10], (hidden, ff))
    p["b1"] = w(ks[11], (ff,))
    p["w2"] = w(ks[12], (ff, hidden))
    p["b2"] = w(ks[13], (hidden,))
    p["g2"] = 1.0 + w(ks[14], (hidden,))
    p["be2"] = w(ks[15], (hidden,))
    return p


# ---------------- cached host-side indicator matrices (param-free) ----------
@functools.lru_cache(maxsize=None)
def _indicator_mats(hidden, heads):
    hd = hidden // heads // 2
    scaling = hd ** -0.5
    R = np.zeros((hidden, 2 * heads), np.float32)        # head_dim block-sum, scaled
    for i in range(2 * heads):
        R[i * hd:(i + 1) * hd, i] = scaling
    Rv = np.zeros((hidden, heads), np.float32)           # value / RMSNorm head blocks
    DposRvT = np.zeros((2 * heads, hidden), np.float32)  # fused D @ Rv.T (positive part)
    DnegRvT = np.zeros((2 * heads, hidden), np.float32)  # fused D @ Rv.T (negative part)
    for j in range(heads):
        Rv[j * 2 * hd:(j + 1) * 2 * hd, j] = 1.0
        DposRvT[2 * j, j * 2 * hd:(j + 1) * 2 * hd] = 1.0
        DnegRvT[2 * j + 1, j * 2 * hd:(j + 1) * 2 * hd] = 1.0
    return R, Rv, DposRvT, DnegRvT


# ------------------------------ wrapper --------------------------------------
def geno2pheno_forward(q, k, v, p, *, heads, bt=None):
    B, Tq, H = q.shape
    assert Tq == 1, "forward() squeezes axis 1: q must have query length 1"
    S = k.shape[1]
    FF = p["w1"].shape[1]
    hd = H // heads // 2
    depth = 1
    bf16, f32 = jnp.bfloat16, jnp.float32

    # ---- batch tiling: BT multiple of 16 (bf16 sublanes); pad B up to Bp ----
    if bt is None:
        bt = min(_round_up(B, 16), 256)      # aim for MXU-native M on v6e/v7x
    bt = max(16, _round_up(bt, 16))
    Bp = _round_up(B, bt)

    q2 = q[:, 0, :].astype(bf16)                               # (B, H)
    kb = k.astype(bf16)
    vb = v.astype(bf16)
    if Bp != B:
        q2 = jnp.pad(q2, ((0, Bp - B), (0, 0)))
        kb = jnp.pad(kb, ((0, Bp - B), (0, 0), (0, 0)))
        vb = jnp.pad(vb, ((0, Bp - B), (0, 0), (0, 0)))
    kb = kb.reshape(Bp * S, H)                                 # pre-flatten for M=BT*S dots
    vb = vb.reshape(Bp * S, H)

    # ---- parameter-only precomputation (fully traceable: jit-safe, no host sync)
    lambda_init = 0.8 - 0.6 * math.exp(-0.3 * depth)
    lam = (jnp.exp(jnp.sum(p["lq1"] * p["lk1"]))
           - jnp.exp(jnp.sum(p["lq2"] * p["lk2"])) + lambda_init).astype(f32)
    R, Rv, DposRvT, DnegRvT = _indicator_mats(H, heads)
    DRvT = jnp.asarray(DposRvT) - lam * jnp.asarray(DnegRvT)   # (2*heads, H)
    subw = jnp.tile(p["subln_w"].astype(f32), heads) * (1.0 - lambda_init)

    # pack the 7 row-vector constants into a single (8, W) tile
    W = max(H, FF)
    def row(vec):
        vec = vec.astype(f32)
        return jnp.pad(vec, (0, W - vec.shape[0]))
    vecs = jnp.stack([row(subw), row(p["g1"]), row(p["be1"]), row(p["b1"]),
                      row(p["b2"]), row(p["g2"]), row(p["be2"]),
                      jnp.zeros((W,), f32)], axis=0)

    weights = [p["wq"].astype(bf16), p["wk"].astype(bf16), p["wv"].astype(bf16),
               p["wo"].astype(bf16), p["w1"].astype(bf16), p["w2"].astype(bf16)]
    indicators = [jnp.asarray(R), DRvT.astype(f32), jnp.asarray(Rv),
                  jnp.asarray(np.ascontiguousarray(Rv.T))]
    consts = weights + indicators + [vecs]

    # NOTE: at production sizes, single-buffer the constant weights (their
    # index_map is constant) and raise vmem_limit_bytes toward physical VMEM.
    def const_spec(a):
        return pl.BlockSpec(a.shape, lambda b: (0,) * a.ndim)

    in_specs = [
        pl.BlockSpec((bt, H), lambda b: (b, 0)),
        pl.BlockSpec((bt * S, H), lambda b: (b, 0)),
        pl.BlockSpec((bt * S, H), lambda b: (b, 0)),
    ] + [const_spec(a) for a in consts]

    kernel = functools.partial(
        geno2pheno_kernel, bt=bt, s=S, h=H, ff=FF, heads=heads,
        two_head_dim=float(2 * hd))

    flops = 2 * Bp * (2 * S * H * H + 2 * H * H + 4 * S * H * heads + 2 * H * FF)
    bytes_accessed = ((q2.size + kb.size + vb.size) * 2
                      + sum(a.size * 2 for a in weights)
                      + sum(a.size * 4 for a in indicators)
                      + vecs.size * 4 + Bp * H * 4)

    fn = pl.pallas_call(
        kernel,
        out_shape=jax.ShapeDtypeStruct((Bp, H), jnp.float32),
        grid_spec=pltpu.PrefetchScalarGridSpec(
            num_scalar_prefetch=0,
            grid=(Bp // bt,),
            in_specs=in_specs,
            out_specs=pl.BlockSpec((bt, H), lambda b: (b, 0)),
        ),
        compiler_params=pltpu.CompilerParams(
            dimension_semantics=("parallel",),     # independent batch blocks (v7x: 2 TCs)
            vmem_limit_bytes=32 * 1024 * 1024,
        ),
        cost_estimate=pl.CostEstimate(
            flops=int(flops),
            transcendentals=int(Bp * (2 * heads * S + FF + heads)),
            bytes_accessed=int(bytes_accessed),
        ),
    )
    out = fn(q2, kb, vb, *consts)
    return out[:B].astype(q.dtype)


# ------------------------------ pure-JAX reference ---------------------------
def reference_forward(q, k, v, p, heads):
    bf16, f32 = jnp.bfloat16, jnp.float32
    B, Tq, H = q.shape
    S = k.shape[1]
    hd = H // heads // 2
    lambda_init = 0.8 - 0.6 * math.exp(-0.3 * 1)
    lam = (jnp.exp(jnp.sum(p["lq1"] * p["lk1"]))
           - jnp.exp(jnp.sum(p["lq2"] * p["lk2"])) + lambda_init)
    scaling = hd ** -0.5

    qb, kbv, vbv = q.astype(bf16), k.astype(bf16), v.astype(bf16)
    qh = jnp.einsum("bth,hd->btd", qb, p["wq"].astype(bf16),
                    preferred_element_type=f32).reshape(B, Tq, 2 * heads, hd)
    qh = qh.transpose(0, 2, 1, 3) * scaling
    kh = jnp.einsum("bsh,hd->bsd", kbv, p["wk"].astype(bf16),
                    preferred_element_type=f32).reshape(B, S, 2 * heads, hd).transpose(0, 2, 1, 3)
    vh = jnp.einsum("bsh,hd->bsd", vbv, p["wv"].astype(bf16),
                    preferred_element_type=f32).reshape(B, S, heads, 2 * hd).transpose(0, 2, 1, 3)
    aw = jnp.einsum("bhqd,bhkd->bhqk", qh, kh)
    aw = jax.nn.softmax(aw, axis=-1)
    aw = aw.reshape(B, heads, 2, Tq, S)
    aw = aw[:, :, 0] - lam * aw[:, :, 1]
    attn = jnp.einsum("bhqk,bhkd->bhqd", aw, vh)
    ms = jnp.mean(attn ** 2, axis=-1, keepdims=True)
    attn = attn * lax.rsqrt(ms + 1e-5) * p["subln_w"]
    attn = attn * (1.0 - lambda_init)
    attn = attn.transpose(0, 2, 1, 3).reshape(B, Tq, H)
    x = jnp.einsum("bth,hd->btd", attn.astype(bf16), p["wo"].astype(bf16),
                   preferred_element_type=f32)[:, 0]           # squeeze(1)
    x = _layernorm(x, p["g1"], p["be1"])
    h1 = _gelu_tanh(jnp.dot(x.astype(bf16), p["w1"].astype(bf16),
                            preferred_element_type=f32) + p["b1"])
    y = jnp.dot(h1.astype(bf16), p["w2"].astype(bf16),
                preferred_element_type=f32) + p["b2"]
    y = _layernorm(y, p["g2"], p["be2"])
    return y


# ------------------------------ main ------------------------------------------
if __name__ == "__main__":
    B, S, H, HEADS, FF = 2, 8, 32, 4, 64

    key = jax.random.PRNGKey(0)
    kq, kk, kv, kp = jax.random.split(key, 4)
    q = jax.random.normal(kq, (B, 1, H), jnp.float32)
    k = jax.random.normal(kk, (B, S, H), jnp.float32)
    v = jax.random.normal(kv, (B, S, H), jnp.float32)
    params = init_params(kp, H, HEADS, FF)

    fwd = jax.jit(geno2pheno_forward, static_argnames=("heads", "bt"))
    out = jax.block_until_ready(fwd(q, k, v, params, heads=HEADS))

    ref = jax.block_until_ready(reference_forward(q, k, v, params, HEADS))
    assert out.shape == (B, H)
    err = float(jnp.max(jnp.abs(out - ref)))
    assert np.isfinite(err) and err < 5e-3, f"mismatch: max abs err {err}"
    print("KERNEL_OK")
</pallas_src>

<mosaic_0001>
module attributes {stable_mosaic.version = 11 : i64} {
  func.func @geno2pheno_kernel(%arg0: i32, %arg1: memref<16x32xbf16, #tpu.memory_space<vmem>>, %arg2: memref<128x32xbf16, #tpu.memory_space<vmem>>, %arg3: memref<128x32xbf16, #tpu.memory_space<vmem>>, %arg4: memref<32x32xbf16, #tpu.memory_space<vmem>>, %arg5: memref<32x32xbf16, #tpu.memory_space<vmem>>, %arg6: memref<32x32xbf16, #tpu.memory_space<vmem>>, %arg7: memref<32x32xbf16, #tpu.memory_space<vmem>>, %arg8: memref<32x64xbf16, #tpu.memory_space<vmem>>, %arg9: memref<64x32xbf16, #tpu.memory_space<vmem>>, %arg10: memref<32x8xf32, #tpu.memory_space<vmem>>, %arg11: memref<8x32xf32, #tpu.memory_space<vmem>>, %arg12: memref<32x4xf32, #tpu.memory_space<vmem>>, %arg13: memref<4x32xf32, #tpu.memory_space<vmem>>, %arg14: memref<8x64xf32, #tpu.memory_space<vmem>>, %arg15: memref<16x32xf32, #tpu.memory_space<vmem>>) attributes {dimension_semantics = [#tpu.dimension_semantics<parallel>], iteration_bounds = array<i64: 1>, scalar_prefetch = 0 : i64, scratch_operands = 0 : i64, tpu.core_type = #tpu.core_type<tc>, window_params = [{transform_indices = @transform_0, window_bounds = array<i64: 16, 32>}, {transform_indices = @transform_1, window_bounds = array<i64: 128, 32>}, {transform_indices = @transform_2, window_bounds = array<i64: 128, 32>}, {pipeline_mode = #tpu.pipeline_mode<synchronous>, transform_indices = @transform_3, window_bounds = array<i64: 32, 32>}, {pipeline_mode = #tpu.pipeline_mode<synchronous>, transform_indices = @transform_4, window_bounds = array<i64: 32, 32>}, {pipeline_mode = #tpu.pipeline_mode<synchronous>, transform_indices = @transform_5, window_bounds = array<i64: 32, 32>}, {pipeline_mode = #tpu.pipeline_mode<synchronous>, transform_indices = @transform_6, window_bounds = array<i64: 32, 32>}, {pipeline_mode = #tpu.pipeline_mode<synchronous>, transform_indices = @transform_7, window_bounds = array<i64: 32, 64>}, {pipeline_mode = #tpu.pipeline_mode<synchronous>, transform_indices = @transform_8, window_bounds = array<i64: 64, 32>}, {pipeline_mode = #tpu.pipeline_mode<synchronous>, transform_indices = @transform_9, window_bounds = array<i64: 32, 8>}, {pipeline_mode = #tpu.pipeline_mode<synchronous>, transform_indices = @transform_10, window_bounds = array<i64: 8, 32>}, {pipeline_mode = #tpu.pipeline_mode<synchronous>, transform_indices = @transform_11, window_bounds = array<i64: 32, 4>}, {pipeline_mode = #tpu.pipeline_mode<synchronous>, transform_indices = @transform_12, window_bounds = array<i64: 4, 32>}, {pipeline_mode = #tpu.pipeline_mode<synchronous>, transform_indices = @transform_13, window_bounds = array<i64: 8, 64>}, {transform_indices = @transform_14, window_bounds = array<i64: 16, 32>}]} {
    %c0 = arith.constant 0 : index
    %c0_0 = arith.constant 0 : index
    %0 = vector.load %arg1[%c0, %c0_0] : memref<16x32xbf16, #tpu.memory_space<vmem>>, vector<16x32xbf16>
    %c0_1 = arith.constant 0 : index
    %c0_2 = arith.constant 0 : index
    %1 = vector.load %arg2[%c0_1, %c0_2] : memref<128x32xbf16, #tpu.memory_space<vmem>>, vector<128x32xbf16>
    %c0_3 = arith.constant 0 : index
    %c0_4 = arith.constant 0 : index
    %2 = vector.load %arg3[%c0_3, %c0_4] : memref<128x32xbf16, #tpu.memory_space<vmem>>, vector<128x32xbf16>
    %c0_5 = arith.constant 0 : index
    %c0_6 = arith.constant 0 : index
    %3 = vector.load %arg4[%c0_5, %c0_6] : memref<32x32xbf16, #tpu.memory_space<vmem>>, vector<32x32xbf16>
    %cst = arith.constant dense<0.000000e+00> : vector<16x32xf32>
    %4 = tpu.matmul %0, %3, %cst {dimension_numbers = #tpu.dot_dimension_numbers<[1], [0], [0], [1], [0, 0, 1, 1], [], []>} : vector<16x32xbf16>, vector<32x32xbf16>, vector<16x32xf32> -> vector<16x32xf32>
    %c0_7 = arith.constant 0 : index
    %c0_8 = arith.constant 0 : index
    %5 = vector.load %arg5[%c0_7, %c0_8] : memref<32x32xbf16, #tpu.memory_space<vmem>>, vector<32x32xbf16>
    %cst_9 = arith.constant dense<0.000000e+00> : vector<128x32xf32>
    %6 = tpu.matmul %1, %5, %cst_9 {dimension_numbers = #tpu.dot_dimension_numbers<[1], [0], [0], [1], [0, 0, 1, 1], [], []>} : vector<128x32xbf16>, vector<32x32xbf16>, vector<128x32xf32> -> vector<128x32xf32>
    %7 = vector.shape_cast %6 : vector<128x32xf32> to vector<16x8x32xf32>
    %c0_10 = arith.constant 0 : index
    %c0_11 = arith.constant 0 : index
    %8 = vector.load %arg6[%c0_10, %c0_11] : memref<32x32xbf16, #tpu.memory_space<vmem>>, vector<32x32xbf16>
    %cst_12 = arith.constant dense<0.000000e+00> : vector<128x32xf32>
    %9 = tpu.matmul %2, %8, %cst_12 {dimension_numbers = #tpu.dot_dimension_numbers<[1], [0], [0], [1], [0, 0, 1, 1], [], []>} : vector<128x32xbf16>, vector<32x32xbf16>, vector<128x32xf32> -> vector<128x32xf32>
    %10 = vector.shape_cast %9 : vector<128x32xf32> to vector<16x8x32xf32>
    %11 = vector.shape_cast %4 : vector<16x32xf32> to vector<16x1x32xf32>
    %12 = vector.broadcast %11 : vector<16x1x32xf32> to vector<16x8x32xf32>
    %13 = arith.mulf %7, %12 : vector<16x8x32xf32>
    %14 = vector.shape_cast %13 : vector<16x8x32xf32> to vector<128x32xf32>
    %c0_13 = arith.constant 0 : index
    %c0_14 = arith.constant 0 : index
    %15 = vector.load %arg10[%c0_13, %c0_14] : memref<32x8xf32, #tpu.memory_space<vmem>>, vector<32x8xf32>
    %cst_15 = arith.constant dense<0.000000e+00> : vector<128x8xf32>
    %16 = tpu.matmul %14, %15, %cst_15 {dimension_numbers = #tpu.dot_dimension_numbers<[1], [0], [0], [1], [0, 0, 1, 1], [], []>} : vector<128x32xf32>, vector<32x8xf32>, vector<128x8xf32> -> vector<128x8xf32>
    %17 = vector.shape_cast %16 : vector<128x8xf32> to vector<16x8x8xf32>
    %cst_16 = arith.constant dense<0xFF800000> : vector<16x8xf32>
    %18 = vector.multi_reduction <maximumf>, %17, %cst_16 [1] : vector<16x8x8xf32> to vector<16x8xf32>
    %19 = vector.shape_cast %18 : vector<16x8xf32> to vector<16x1x8xf32>
    %20 = vector.broadcast %19 : vector<16x1x8xf32> to vector<16x8x8xf32>
    %21 = arith.subf %17, %20 : vector<16x8x8xf32>
    %22 = math.exp %21 : vector<16x8x8xf32>
    %cst_17 = arith.constant dense<0.000000e+00> : vector<16x8xf32>
    %23 = vector.multi_reduction <add>, %22, %cst_17 [1] : vector<16x8x8xf32> to vector<16x8xf32>
    %24 = vector.shape_cast %23 : vector<16x8xf32> to vector<16x1x8xf32>
    %25 = vector.broadcast %24 : vector<16x1x8xf32> to vector<16x8x8xf32>
    %26 = arith.divf %22, %25 : vector<16x8x8xf32>
    %27 = vector.shape_cast %26 : vector<16x8x8xf32> to vector<128x8xf32>
    %c0_18 = arith.constant 0 : index
    %c0_19 = arith.constant 0 : index
    %28 = vector.load %arg11[%c0_18, %c0_19] : memref<8x32xf32, #tpu.memory_space<vmem>>, vector<8x32xf32>
    %cst_20 = arith.constant dense<0.000000e+00> : vector<128x32xf32>
    %29 = tpu.matmul %27, %28, %cst_20 {dimension_numbers = #tpu.dot_dimension_numbers<[1], [0], [0], [1], [0, 0, 1, 1], [], []>} : vector<128x8xf32>, vector<8x32xf32>, vector<128x32xf32> -> vector<128x32xf32>
    %30 = vector.shape_cast %29 : vector<128x32xf32> to vector<16x8x32xf32>
    %31 = arith.mulf %30, %10 : vector<16x8x32xf32>
    %cst_21 = arith.constant dense<0.000000e+00> : vector<16x32xf32>
    %32 = vector.multi_reduction <add>, %31, %cst_21 [1] : vector<16x8x32xf32> to vector<16x32xf32>
    %33 = arith.mulf %32, %32 : vector<16x32xf32>
    %c0_22 = arith.constant 0 : index
    %c0_23 = arith.constant 0 : index
    %34 = vector.load %arg12[%c0_22, %c0_23] : memref<32x4xf32, #tpu.memory_space<vmem>>, vector<32x4xf32>
    %cst_24 = arith.constant dense<0.000000e+00> : vector<16x4xf32>
    %35 = tpu.matmul %33, %34, %cst_24 {dimension_numbers = #tpu.dot_dimension_numbers<[1], [0], [0], [1], [0, 0, 1, 1], [], []>} : vector<16x32xf32>, vector<32x4xf32>, vector<16x4xf32> -> vector<16x4xf32>
    %cst_25 = arith.constant 8.000000e+00 : f32
    %36 = vector.broadcast %cst_25 : f32 to vector<16x4xf32>
    %37 = arith.divf %35, %36 : vector<16x4xf32>
    %cst_26 = arith.constant 9.99999974E-6 : f32
    %38 = vector.broadcast %cst_26 : f32 to vector<16x4xf32>
    %39 = arith.addf %37, %38 : vector<16x4xf32>
    %40 = math.rsqrt %39 : vector<16x4xf32>
    %c0_27 = arith.constant 0 : index
    %c0_28 = arith.constant 0 : index
    %41 = vector.load %arg13[%c0_27, %c0_28] : memref<4x32xf32, #tpu.memory_space<vmem>>, vector<4x32xf32>
    %cst_29 = arith.constant dense<0.000000e+00> : vector<16x32xf32>
    %42 = tpu.matmul %40, %41, %cst_29 {dimension_numbers = #tpu.dot_dimension_numbers<[1], [0], [0], [1], [0, 0, 1, 1], [], []>} : vector<16x4xf32>, vector<4x32xf32>, vector<16x32xf32> -> vector<16x32xf32>
    %c0_30 = arith.constant 0 : index
    %c0_31 = arith.constant 0 : index
    %43 = vector.load %arg14[%c0_30, %c0_31] : memref<8x64xf32, #tpu.memory_space<vmem>>, vector<1x32xf32>
    %c1 = arith.constant 1 : index
    %c0_32 = arith.constant 0 : index
    %44 = vector.load %arg14[%c1, %c0_32] : memref<8x64xf32, #tpu.memory_space<vmem>>, vector<1x32xf32>
    %c2 = arith.constant 2 : index
    %c0_33 = arith.constant 0 : index
    %45 = vector.load %arg14[%c2, %c0_33] : memref<8x64xf32, #tpu.memory_space<vmem>>, vector<1x32xf32>
    %c3 = arith.constant 3 : index
    %c0_34 = arith.constant 0 : index
    %46 = vector.load %arg14[%c3, %c0_34] : memref<8x64xf32, #tpu.memory_space<vmem>>, vector<1x64xf32>
    %c4 = arith.constant 4 : index
    %c0_35 = arith.constant 0 : index
    %47 = vector.load %arg14[%c4, %c0_35] : memref<8x64xf32, #tpu.memory_space<vmem>>, vector<1x32xf32>
    %c5 = arith.constant 5 : index
    %c0_36 = arith.constant 0 : index
    %48 = vector.load %arg14[%c5, %c0_36] : memref<8x64xf32, #tpu.memory_space<vmem>>, vector<1x32xf32>
    %c6 = arith.constant 6 : index
    %c0_37 = arith.constant 0 : index
    %49 = vector.load %arg14[%c6, %c0_37] : memref<8x64xf32, #tpu.memory_space<vmem>>, vector<1x32xf32>
    %50 = arith.mulf %32, %42 : vector<16x32xf32>
    %51 = vector.broadcast %43 : vector<1x32xf32> to vector<16x32xf32>
    %52 = arith.mulf %50, %51 : vector<16x32xf32>
    %53 = arith.truncf %52 : vector<16x32xf32> to vector<16x32xbf16>
    %c0_38 = arith.constant 0 : index
    %c0_39 = arith.constant 0 : index
    %54 = vector.load %arg7[%c0_38, %c0_39] : memref<32x32xbf16, #tpu.memory_space<vmem>>, vector<32x32xbf16>
    %cst_40 = arith.constant dense<0.000000e+00> : vector<16x32xf32>
    %55 = tpu.matmul %53, %54, %cst_40 {dimension_numbers = #tpu.dot_dimension_numbers<[1], [0], [0], [1], [0, 0, 1, 1], [], []>} : vector<16x32xbf16>, vector<32x32xbf16>, vector<16x32xf32> -> vector<16x32xf32>
    %cst_41 = arith.constant dense<0.000000e+00> : vector<16xf32>
    %56 = vector.multi_reduction <add>, %55, %cst_41 [1] : vector<16x32xf32> to vector<16xf32>
    %57 = vector.shape_cast %56 : vector<16xf32> to vector<16x1xf32>
    %cst_42 = arith.constant 3.200000e+01 : f32
    %58 = vector.broadcast %cst_42 : f32 to vector<16x1xf32>
    %59 = arith.divf %57, %58 : vector<16x1xf32>
    %60 = vector.broadcast %59 : vector<16x1xf32> to vector<16x32xf32>
    %61 = arith.subf %55, %60 : vector<16x32xf32>
    %62 = arith.mulf %61, %61 : vector<16x32xf32>
    %cst_43 = arith.constant dense<0.000000e+00> : vector<16xf32>
    %63 = vector.multi_reduction <add>, %62, %cst_43 [1] : vector<16x32xf32> to vector<16xf32>
    %64 = vector.shape_cast %63 : vector<16xf32> to vector<16x1xf32>
    %cst_44 = arith.constant 3.200000e+01 : f32
    %65 = vector.broadcast %cst_44 : f32 to vector<16x1xf32>
    %66 = arith.divf %64, %65 : vector<16x1xf32>
    %67 = vector.broadcast %59 : vector<16x1xf32> to vector<16x32xf32>
    %68 = arith.subf %55, %67 : vector<16x32xf32>
    %cst_45 = arith.constant 9.99999974E-6 : f32
    %69 = vector.broadcast %cst_45 : f32 to vector<16x1xf32>
    %70 = arith.addf %66, %69 : vector<16x1xf32>
    %71 = math.rsqrt %70 : vector<16x1xf32>
    %72 = vector.broadcast %71 : vector<16x1xf32> to vector<16x32xf32>
    %73 = arith.mulf %68, %72 : vector<16x32xf32>
    %74 = vector.broadcast %44 : vector<1x32xf32> to vector<16x32xf32>
    %75 = arith.mulf %73, %74 : vector<16x32xf32>
    %76 = vector.broadcast %45 : vector<1x32xf32> to vector<16x32xf32>
    %77 = arith.addf %75, %76 : vector<16x32xf32>
    %78 = arith.truncf %77 : vector<16x32xf32> to vector<16x32xbf16>
    %c0_46 = arith.constant 0 : index
    %c0_47 = arith.constant 0 : index
    %79 = vector.load %arg8[%c0_46, %c0_47] : memref<32x64xbf16, #tpu.memory_space<vmem>>, vector<32x64xbf16>
    %cst_48 = arith.constant dense<0.000000e+00> : vector<16x64xf32>
    %80 = tpu.matmul %78, %79, %cst_48 {dimension_numbers = #tpu.dot_dimension_numbers<[1], [0], [0], [1], [0, 0, 1, 1], [], []>} : vector<16x32xbf16>, vector<32x64xbf16>, vector<16x64xf32> -> vector<16x64xf32>
    %81 = vector.broadcast %46 : vector<1x64xf32> to vector<16x64xf32>
    %82 = arith.addf %80, %81 : vector<16x64xf32>
    %cst_49 = arith.constant 5.000000e-01 : f32
    %83 = vector.broadcast %cst_49 : f32 to vector<16x64xf32>
    %84 = arith.mulf %83, %82 : vector<16x64xf32>
    %cst_50 = arith.constant 4.471500e-02 : f32
    %85 = vector.broadcast %cst_50 : f32 to vector<16x64xf32>
    %86 = arith.mulf %85, %82 : vector<16x64xf32>
    %87 = arith.mulf %86, %82 : vector<16x64xf32>
    %88 = arith.mulf %87, %82 : vector<16x64xf32>
    %89 = arith.addf %82, %88 : vector<16x64xf32>
    %cst_51 = arith.constant 0.797884583 : f32
    %90 = vector.broadcast %cst_51 : f32 to vector<16x64xf32>
    %91 = arith.mulf %90, %89 : vector<16x64xf32>
    %92 = math.tanh %91 : vector<16x64xf32>
    %cst_52 = arith.constant 1.000000e+00 : f32
    %93 = vector.broadcast %cst_52 : f32 to vector<16x64xf32>
    %94 = arith.addf %93, %92 : vector<16x64xf32>
    %95 = arith.mulf %84, %94 : vector<16x64xf32>
    %96 = arith.truncf %95 : vector<16x64xf32> to vector<16x64xbf16>
    %c0_53 = arith.constant 0 : index
    %c0_54 = arith.constant 0 : index
    %97 = vector.load %arg9[%c0_53, %c0_54] : memref<64x32xbf16, #tpu.memory_space<vmem>>, vector<64x32xbf16>
    %cst_55 = arith.constant dense<0.000000e+00> : vector<16x32xf32>
    %98 = tpu.matmul %96, %97, %cst_55 {dimension_numbers = #tpu.dot_dimension_numbers<[1], [0], [0], [1], [0, 0, 1, 1], [], []>} : vector<16x64xbf16>, vector<64x32xbf16>, vector<16x32xf32> -> vector<16x32xf32>
    %99 = vector.broadcast %47 : vector<1x32xf32> to vector<16x32xf32>
    %100 = arith.addf %98, %99 : vector<16x32xf32>
    %cst_56 = arith.constant dense<0.000000e+00> : vector<16xf32>
    %101 = vector.multi_reduction <add>, %100, %cst_56 [1] : vector<16x32xf32> to vector<16xf32>
    %102 = vector.shape_cast %101 : vector<16xf32> to vector<16x1xf32>
    %cst_57 = arith.constant 3.200000e+01 : f32
    %103 = vector.broadcast %cst_57 : f32 to vector<16x1xf32>
    %104 = arith.divf %102, %103 : vector<16x1xf32>
    %105 = vector.broadcast %104 : vector<16x1xf32> to vector<16x32xf32>
    %106 = arith.subf %100, %105 : vector<16x32xf32>
    %107 = arith.mulf %106, %106 : vector<16x32xf32>
    %cst_58 = arith.constant dense<0.000000e+00> : vector<16xf32>
    %108 = vector.multi_reduction <add>, %107, %cst_58 [1] : vector<16x32xf32> to vector<16xf32>
    %109 = vector.shape_cast %108 : vector<16xf32> to vector<16x1xf32>
    %cst_59 = arith.constant 3.200000e+01 : f32
    %110 = vector.broadcast %cst_59 : f32 to vector<16x1xf32>
    %111 = arith.divf %109, %110 : vector<16x1xf32>
    %112 = vector.broadcast %104 : vector<16x1xf32> to vector<16x32xf32>
    %113 = arith.subf %100, %112 : vector<16x32xf32>
    %cst_60 = arith.constant 9.99999974E-6 : f32
    %114 = vector.broadcast %cst_60 : f32 to vector<16x1xf32>
    %115 = arith.addf %111, %114 : vector<16x1xf32>
    %116 = math.rsqrt %115 : vector<16x1xf32>
    %117 = vector.broadcast %116 : vector<16x1xf32> to vector<16x32xf32>
    %118 = arith.mulf %113, %117 : vector<16x32xf32>
    %119 = vector.broadcast %48 : vector<1x32xf32> to vector<16x32xf32>
    %120 = arith.mulf %118, %119 : vector<16x32xf32>
    %121 = vector.broadcast %49 : vector<1x32xf32> to vector<16x32xf32>
    %122 = arith.addf %120, %121 : vector<16x32xf32>
    %c0_61 = arith.constant 0 : index
    %c0_62 = arith.constant 0 : index
    %123 = vector.load %arg15[%c0_61, %c0_62] : memref<16x32xf32, #tpu.memory_space<vmem>>, vector<16x32xf32>
    tpu.vector_store %arg15[%c0_61, %c0_62], %122 {strides = array<i32>} : memref<16x32xf32, #tpu.memory_space<vmem>>, vector<16x32xf32>,
    return
  }
  func.func @transform_0(%arg0: i32) -> (i32, i32) {
    %c0_i32 = arith.constant 0 : i32
    %c0_i32_0 = arith.constant 0 : i32
    return %arg0, %c0_i32 : i32, i32
  }
  func.func @transform_1(%arg0: i32) -> (i32, i32) {
    %c0_i32 = arith.constant 0 : i32
    %c0_i32_0 = arith.constant 0 : i32
    return %arg0, %c0_i32 : i32, i32
  }
  func.func @transform_2(%arg0: i32) -> (i32, i32) {
    %c0_i32 = arith.constant 0 : i32
    %c0_i32_0 = arith.constant 0 : i32
    return %arg0, %c0_i32 : i32, i32
  }
  func.func @transform_3(%arg0: i32) -> (i32, i32) {
    %c0_i32 = arith.constant 0 : i32
    %c0_i32_0 = arith.constant 0 : i32
    %c0_i32_1 = arith.constant 0 : i32
    return %c0_i32, %c0_i32_0 : i32, i32
  }
  func.func @transform_4(%arg0: i32) -> (i32, i32) {
    %c0_i32 = arith.constant 0 : i32
    %c0_i32_0 = arith.constant 0 : i32
    %c0_i32_1 = arith.constant 0 : i32
    return %c0_i32, %c0_i32_0 : i32, i32
  }
  func.func @transform_5(%arg0: i32) -> (i32, i32) {
    %c0_i32 = arith.constant 0 : i32
    %c0_i32_0 = arith.constant 0 : i32
    %c0_i32_1 = arith.constant 0 : i32
    return %c0_i32, %c0_i32_0 : i32, i32
  }
  func.func @transform_6(%arg0: i32) -> (i32, i32) {
    %c0_i32 = arith.constant 0 : i32
    %c0_i32_0 = arith.constant 0 : i32
    %c0_i32_1 = arith.constant 0 : i32
    return %c0_i32, %c0_i32_0 : i32, i32
  }
  func.func @transform_7(%arg0: i32) -> (i32, i32) {
    %c0_i32 = arith.constant 0 : i32
    %c0_i32_0 = arith.constant 0 : i32
    %c0_i32_1 = arith.constant 0 : i32
    return %c0_i32, %c0_i32_0 : i32, i32
  }
  func.func @transform_8(%arg0: i32) -> (i32, i32) {
    %c0_i32 = arith.constant 0 : i32
    %c0_i32_0 = arith.constant 0 : i32
    %c0_i32_1 = arith.constant 0 : i32
    return %c0_i32, %c0_i32_0 : i32, i32
  }
  func.func @transform_9(%arg0: i32) -> (i32, i32) {
    %c0_i32 = arith.constant 0 : i32
    %c0_i32_0 = arith.constant 0 : i32
    %c0_i32_1 = arith.constant 0 : i32
    return %c0_i32, %c0_i32_0 : i32, i32
  }
  func.func @transform_10(%arg0: i32) -> (i32, i32) {
    %c0_i32 = arith.constant 0 : i32
    %c0_i32_0 = arith.constant 0 : i32
    %c0_i32_1 = arith.constant 0 : i32
    return %c0_i32, %c0_i32_0 : i32, i32
  }
  func.func @transform_11(%arg0: i32) -> (i32, i32) {
    %c0_i32 = arith.constant 0 : i32
    %c0_i32_0 = arith.constant 0 : i32
    %c0_i32_1 = arith.constant 0 : i32
    return %c0_i32, %c0_i32_0 : i32, i32
  }
  func.func @transform_12(%arg0: i32) -> (i32, i32) {
    %c0_i32 = arith.constant 0 : i32
    %c0_i32_0 = arith.constant 0 : i32
    %c0_i32_1 = arith.constant 0 : i32
    return %c0_i32, %c0_i32_0 : i32, i32
  }
  func.func @transform_13(%arg0: i32) -> (i32, i32) {
    %c0_i32 = arith.constant 0 : i32
    %c0_i32_0 = arith.constant 0 : i32
    %c0_i32_1 = arith.constant 0 : i32
    return %c0_i32, %c0_i32_0 : i32, i32
  }
  func.func @transform_14(%arg0: i32) -> (i32, i32) {
    %c0_i32 = arith.constant 0 : i32
    %c0_i32_0 = arith.constant 0 : i32
    return %arg0, %c0_i32 : i32, i32
  }
}

</mosaic_0001>

<bundles_post_ra>
// kernel: geno2pheno_forward.1
= control target key start
LH: loop header
LB: loop body
LE: loop exit
PB: predicated region body
PF: predicated region fallthrough
CT: control target
= control target key end

     0   :  { %vm103_vm0 = vcmask 261120   ;;  %vm560_vm1 = vcmask 64512   ;;  %s2852_s3 = inlined_call_operand.vmem [shape: bf16[32,32], index: 3, kind: input, shape index: {}]   ;;  %s2853_s4 = inlined_call_operand.vmem [shape: bf16[32,32], index: 4, kind: input, shape index: {}]   ;;  %s2854_s0 = inlined_call_operand.vmem [shape: bf16[16,32], index: 0, kind: input, shape index: {}]   ;;  %s2855_s1 = inlined_call_operand.vmem [shape: bf16[128,32], index: 1, kind: input, shape index: {}]   ;;  %s2856_s9 = inlined_call_operand.vmem [shape: f32[32,8], index: 9, kind: input, shape index: {}]   ;;  %s2857_s5 = inlined_call_operand.vmem [shape: bf16[32,32], index: 5, kind: input, shape index: {}]   ;;  %s2858_s2 = inlined_call_operand.vmem [shape: bf16[128,32], index: 2, kind: input, shape index: {}]   ;;  %s2859_s10 = inlined_call_operand.vmem [shape: f32[8,32], index: 10, kind: input, shape index: {}]   ;;  %s2860_s11 = inlined_call_operand.vmem [shape: f32[32,4], index: 11, kind: input, shape index: {}]   ;;  %s2861_s13 = inlined_call_operand.vmem [shape: f32[8,64], index: 13, kind: input, shape index: {}]   ;;  %s2862_s12 = inlined_call_operand.vmem [shape: f32[4,32], index: 12, kind: input, shape index: {}]   ;;  %s2863_s6 = inlined_call_operand.vmem [shape: bf16[32,32], index: 6, kind: input, shape index: {}]   ;;  %s2864_s7 = inlined_call_operand.vmem [shape: bf16[32,64], index: 7, kind: input, shape index: {}]   ;;  %s2865_s8 = inlined_call_operand.vmem [shape: bf16[64,32], index: 8, kind: input, shape index: {}]   ;;  %s2866_s14 = inlined_call_operand.vmem [shape: f32[16,32], index: 14, kind: output, shape index: {}]  }
   0x1   :  { %v2064_v0 = vld [vmem:[%s2852_s3 + $0x8] sm:$0xff]  ;;  %v2063_v2 = vld [vmem:[%s2852_s3] sm:$0xff]  ;;  %v2049_v7 = vld [vmem:[%s2855_s1 + $0x10] sm:$0xff] }
   0x2   :  { %v2066_v1 = vld [vmem:[%s2853_s4 + $0x8] sm:$0xff]  ;;  %113 = vmatpush.bf16.msra.mxu0 %v2064_v0  ;;  %v2065_v3 = vld [vmem:[%s2853_s4] sm:$0xff]  ;;  %v2050_v8 = vld [vmem:[%s2855_s1 + $0x18] sm:$0xff] }
   0x3   :  { %207 = vmatpush.bf16.msra.mxu1 %v2066_v1  ;;  %v2046_v4 = vld [vmem:[%s2854_s0] sm:$0xff]  ;;  %v2048_v6 = vld [vmem:[%s2855_s1 + $0x8] sm:$0xff]  ;;  %v446_v11 = vld [vmem:[%s2856_s9 + $0x18] sm:$0xff] }
   0x4   :  { %v2047_v5 = vld [vmem:[%s2855_s1] sm:$0xff]  ;;  %v2052_v10 = vld [vmem:[%s2855_s1 + $0x28] sm:$0xff]  ;;  %507 = vmatpush.msra.mxu3 %v446_v11  ;;  %v2053_v12 = vld [vmem:[%s2855_s1 + $0x30] sm:$0xff] }
   0x5   :  { %v2051_v9 = vld [vmem:[%s2855_s1 + $0x20] sm:$0xff]  ;;  %v445_v13 = vld [vmem:[%s2856_s9 + $0x10] sm:$0xff]  ;;  %v444_v14 = vld [vmem:[%s2856_s9 + $0x8] sm:$0xff] }
   0x6   :  { %114 = vmatpush.bf16.msra.mxu0 %v2063_v2  ;;  %508 = vmatpush.msra.mxu3 %v445_v13  ;;  %v443_v15 = vld [vmem:[%s2856_s9] sm:$0xff]  ;;  %v2054_v16 = vld [vmem:[%s2855_s1 + $0x38] sm:$0xff] }
   0x7   :  { %208 = vmatpush.bf16.msra.mxu1 %v2065_v3 }
   0x8   :  { %509 = vmatpush.msra.mxu3 %v444_v14 }
   0x9   :  { %1877 = vmatmul.msk.bf16.vlgmr.msra.gmra.mxu0 %vm103_vm0, %v2046_v4 }
   0xa   :  { %1918 = vmatmul.msk.bf16.vlgmr.msra.gmra.mxu1 %vm103_vm0, %v2047_v5  ;;  %510 = vmatpush.msra.mxu3 %v443_v15 }
  0x1a   :  { %1919 = vmatmul.msk.bf16.gmra.mxu1 %vm103_vm0, %v2048_v6 }
  0x2a   :  { %1920 = vmatmul.msk.bf16.gmra.mxu1 %vm103_vm0, %v2049_v7 }
  0x3a   :  { %1921 = vmatmul.msk.bf16.gmra.mxu1 %vm103_vm0, %v2050_v8 }
  0x4a   :  { %1922 = vmatmul.msk.bf16.gmra.mxu1 %vm103_vm0, %v2051_v9 }
  0x5a   :  { %1923 = vmatmul.msk.bf16.gmra.mxu1 %vm103_vm0, %v2052_v10 }
  0x6a   :  { %1924 = vmatmul.msk.bf16.gmra.mxu1 %vm103_vm0, %v2053_v12 }
  0x7a   :  { %1925 = vmatmul.msk.bf16.gmra.mxu1 %vm103_vm0, %v2054_v16 }
  0x86   :  { %v116_v17 = vpop.f32.mrf.mxu0 }
  0x87   :  { %v210_v18 = vpop.f32.mrf.mxu1  ;;  %v395_v19 = vperm.slane %v116_v17, 0  ;;  %v381_v21 = vrot.slane %v116_v17, 1  ;;  %v382_v25 = vrot.slane %v116_v17, 2  ;;  %v383_v29 = vrot.slane %v116_v17, 3 }
  0x88   :  { %v384_v33 = vrot.slane %v116_v17, 4  ;;  %v385_v37 = vrot.slane %v116_v17, 5  ;;  %v386_v41 = vrot.slane %v116_v17, 6  ;;  %v387_v45 = vrot.slane %v116_v17, 7 }
  0x89   :  { %v427_v20 = vmul.f32 %v395_v19, %v210_v18  ;;  %v396_v23 = vperm.slane %v381_v21, 0  ;;  %v397_v27 = vperm.slane %v382_v25, 0  ;;  %v398_v31 = vperm.slane %v383_v29, 0 }
  0x8a   :  { %v399_v35 = vperm.slane %v384_v33, 0  ;;  %v400_v39 = vperm.slane %v385_v37, 0  ;;  %v401_v43 = vperm.slane %v386_v41, 0  ;;  %v402_v47 = vperm.slane %v387_v45, 0 }
  0x8b   :  { %1974 = vmatmul.msk.f32.vlgmr.msra.gmra.mxu3 %vm103_vm0, %v427_v20  ;;  %v2068_v20 = vld [vmem:[%s2857_s5 + $0x8] sm:$0xff] }
  0x8c   :  { %336 = vmatpush.bf16.msra.mxu2 %v2068_v20 }
  0x8e   :  { %v118_v49 = vpop.f32.mrf.mxu0 }
  0x8f   :  { %v212_v22 = vpop.f32.mrf.mxu1  ;;  %v403_v51 = vperm.slane %v118_v49, 0  ;;  %v388_v53 = vrot.slane %v118_v49, 1  ;;  %v389_v57 = vrot.slane %v118_v49, 2  ;;  %v390_v61 = vrot.slane %v118_v49, 3 }
  0x90   :  { %v428_v24 = vmul.f32 %v396_v23, %v212_v22  ;;  %v391_v1 = vrot.slane %v118_v49, 4  ;;  %v392_v5 = vrot.slane %v118_v49, 5  ;;  %v393_v9 = vrot.slane %v118_v49, 6  ;;  %v2067_v23 = vld [vmem:[%s2857_s5] sm:$0xff] }
  0x91   :  { %v404_v55 = vperm.slane %v388_v53, 0  ;;  %v405_v59 = vperm.slane %v389_v57, 0  ;;  %v406_v63 = vperm.slane %v390_v61, 0  ;;  %v394_v13 = vrot.slane %v118_v49, 7  ;;  %337 = vmatpush.bf16.msra.mxu2 %v2067_v23 }
  0x92   :  { %v407_v3 = vperm.slane %v391_v1, 0  ;;  %v408_v7 = vperm.slane %v392_v5, 0  ;;  %v409_v11 = vperm.slane %v393_v9, 0 }
  0x93   :  { %1975 = vmatmul.msk.f32.gmra.mxu3 %vm103_vm0, %v428_v24  ;;  %v410_v15 = vperm.slane %v394_v13, 0 }
  0x97   :  { %v215_v26 = vpop.f32.mrf.mxu1 }
  0x98   :  { %v429_v28 = vmul.f32 %v397_v27, %v215_v26  ;;  %v2055_v27 = vld [vmem:[%s2858_s2] sm:$0xff] }
  0x99   :  { %1966 = vmatmul.msk.bf16.vlgmr.msra.gmra.mxu2 %vm103_vm0, %v2055_v27 }
  0x9b   :  { %1976 = vmatmul.msk.f32.gmra.mxu3 %vm103_vm0, %v429_v28 }
  0x9f   :  { %v217_v30 = vpop.f32.mrf.mxu1 }
  0xa0   :  { %v430_v32 = vmul.f32 %v398_v31, %v217_v30 }
  0xa3   :  { %1977 = vmatmul.msk.f32.gmra.mxu3 %vm103_vm0, %v430_v32 }
  0xa7   :  { %v220_v34 = vpop.f32.mrf.mxu1 }
  0xa8   :  { %v431_v36 = vmul.f32 %v399_v35, %v220_v34 }
  0xab   :  { %1978 = vmatmul.msk.f32.gmra.mxu3 %vm103_vm0, %v431_v36 }
  0xaf   :  { %v222_v38 = vpop.f32.mrf.mxu1 }
  0xb0   :  { %v432_v40 = vmul.f32 %v400_v39, %v222_v38 }
  0xb3   :  { %1979 = vmatmul.msk.f32.gmra.mxu3 %vm103_vm0, %v432_v40 }
  0xb7   :  { %v225_v42 = vpop.f32.mrf.mxu1 }
  0xb8   :  { %v433_v44 = vmul.f32 %v401_v43, %v225_v42 }
  0xbb   :  { %1980 = vmatmul.msk.f32.gmra.mxu3 %vm103_vm0, %v433_v44 }
  0xbf   :  { %v227_v46 = vpop.f32.mrf.mxu1 }
  0xc0   :  { %v434_v48 = vmul.f32 %v402_v47, %v227_v46 }
  0xc3   :  { %1981 = vmatmul.msk.f32.gmra.mxu3 %vm103_vm0, %v434_v48 }
  0xc7   :  { %v230_v50 = vpop.f32.mrf.mxu1 }
  0xc8   :  { %v435_v52 = vmul.f32 %v403_v51, %v230_v50  ;;  %v1073_v50 = vld [vmem:[%s2859_s10] sm:$0xff]  ;;  %v2056_v51 = vld [vmem:[%s2858_s2 + $0x8] sm:$0xff] }
  0xc9   :  { %2077 = vmatpush.msrb.mxu2 %v1073_v50  ;;  %1137 = vmatpush.msrb.mxu0 %v1073_v50 }
  0xca   :  { %1967 = vmatmul.msk.bf16.gmra.mxu2 %vm103_vm0, %v2056_v51 }
  0xcb   :  { %1982 = vmatmul.msk.f32.gmra.mxu3 %vm103_vm0, %v435_v52 }
  0xcf   :  { %v232_v54 = vpop.f32.mrf.mxu1 }
  0xd0   :  { %v436_v56 = vmul.f32 %v404_v55, %v232_v54 }
  0xd3   :  { %1983 = vmatmul.msk.f32.gmra.mxu3 %vm103_vm0, %v436_v56 }
  0xd7   :  { %v235_v58 = vpop.f32.mrf.mxu1 }
  0xd8   :  { %v437_v60 = vmul.f32 %v405_v59, %v235_v58 }
  0xdb   :  { %1984 = vmatmul.msk.f32.gmra.mxu3 %vm103_vm0, %v437_v60 }
  0xdf   :  { %v237_v62 = vpop.f32.mrf.mxu1 }
  0xe0   :  { %v438_v0 = vmul.f32 %v406_v63, %v237_v62 }
  0xe3   :  { %1985 = vmatmul.msk.f32.gmra.mxu3 %vm103_vm0, %v438_v0 }
  0xe7   :  { %v240_v2 = vpop.f32.mrf.mxu1 }
  0xe8   :  { %v439_v4 = vmul.f32 %v407_v3, %v240_v2 }
  0xeb   :  { %1986 = vmatmul.msk.f32.gmra.mxu3 %vm103_vm0, %v439_v4 }
  0xef   :  { %v242_v6 = vpop.f32.mrf.mxu1 }
  0xf0   :  { %v440_v8 = vmul.f32 %v408_v7, %v242_v6 }
  0xf3   :  { %1987 = vmatmul.msk.f32.gmra.mxu3 %vm103_vm0, %v440_v8 }
  0xf7   :  { %v245_v10 = vpop.f32.mrf.mxu1 }
  0xf8   :  { %v441_v12 = vmul.f32 %v409_v11, %v245_v10 }
  0xfb   :  { %1988 = vmatmul.msk.f32.gmra.mxu3 %vm103_vm0, %v441_v12 }
  0xff   :  { %v247_v14 = vpop.f32.mrf.mxu1 }
 0x100   :  { %v442_v16 = vmul.f32 %v410_v15, %v247_v14 }
 0x103   :  { %1989 = vmatmul.msk.f32.gmra.mxu3 %vm103_vm0, %v442_v16 }
 0x10e   :  { %v512_v17 = vpop.f32.mrf.mxu3 }
 0x10f   :  { %v561_v18 = vsel %vm560_vm1, %v512_v17, -inf }
 0x110   :  { %v562_v19 = vrot.slane %v561_v18, 4 }
 0x112   :  { %v563_v21 = vmax.f32 %v561_v18, %v562_v19 }
 0x114   :  { %v564_v22 = vrot.slane %v563_v21, 2 }
 0x116   :  { %v565_v24 = vmax.f32 %v563_v21, %v564_v22  ;;  %v515_v25 = vpop.f32.mrf.mxu3 }
 0x117   :  { %v568_v26 = vsel %vm560_vm1, %v515_v25, -inf }
 0x118   :  { %v566_v28 = vrot.slane %v565_v24, 1  ;;  %v569_v29 = vrot.slane %v568_v26, 4 }
 0x11a   :  { %v567_v30 = vmax.f32 %v565_v24, %v566_v28  ;;  %v570_v31 = vmax.f32 %v568_v26, %v569_v29 }
 0x11c   :  { %v673_v32 = vsub.f32 %v512_v17, %v567_v30  ;;  %v571_v33 = vrot.slane %v570_v31, 2 }
 0x11e   :  { %v689_v34 = vmul.f32 1.442695, %v673_v32  ;;  %v572_v35 = vmax.f32 %v570_v31, %v571_v33  ;;  %v518_v36 = vpop.f32.mrf.mxu3 }
 0x11f   :  { %v575_v37 = vsel %vm560_vm1, %v518_v36, -inf }
 0x120   :  { %2087 = vpow2.f32 %v689_v34  ;;  %v573_v38 = vrot.slane %v572_v35, 1  ;;  %v576_v39 = vrot.slane %v575_v37, 4 }
 0x122   :  { %v574_v40 = vmax.f32 %v572_v35, %v573_v38  ;;  %v577_v41 = vmax.f32 %v575_v37, %v576_v39 }
 0x124   :  { %v674_v42 = vsub.f32 %v515_v25, %v574_v40  ;;  %v578_v43 = vrot.slane %v577_v41, 2  ;;  %v2057_v25 = vld [vmem:[%s2858_s2 + $0x10] sm:$0xff] }
 0x125   :  { %1968 = vmatmul.msk.bf16.gmra.mxu2 %vm103_vm0, %v2057_v25 }
 0x126   :  { %v2337_v44 = vpop.eup %2087  ;;  %v691_v45 = vmul.f32 1.442695, %v674_v42  ;;  %v579_v46 = vmax.f32 %v577_v41, %v578_v43  ;;  %v521_v47 = vpop.f32.mrf.mxu3 }
 0x127   :  { %v721_v48 = vsel %vm560_vm1, %v2337_v44, 0.0  ;;  %v582_v49 = vsel %vm560_vm1, %v521_v47, -inf }
 0x128   :  { %v722_v52 = vrot.slane %v721_v48, 4  ;;  %2089 = vpow2.f32 %v691_v45  ;;  %v580_v53 = vrot.slane %v579_v46, 1  ;;  %v583_v54 = vrot.slane %v582_v49, 4 }
 0x12a   :  { %v723_v55 = vadd.f32 %v722_v52, %v721_v48  ;;  %v581_v56 = vmax.f32 %v579_v46, %v580_v53  ;;  %v584_v57 = vmax.f32 %v582_v49, %v583_v54 }
 0x12c   :  { %v724_v58 = vrot.slane %v723_v55, 2  ;;  %v675_v59 = vsub.f32 %v518_v36, %v581_v56  ;;  %v585_v60 = vrot.slane %v584_v57, 2 }
 0x12e   :  { %v2349_v61 = vpop.eup %2089  ;;  %v725_v62 = vadd.f32 %v724_v58, %v723_v55  ;;  %v693_v63 = vmul.f32 1.442695, %v675_v59  ;;  %v586_v0 = vmax.f32 %v584_v57, %v585_v60  ;;  %v524_v1 = vpop.f32.mrf.mxu3 }
 0x12f   :  { %v728_v2 = vsel %vm560_vm1, %v2349_v61, 0.0  ;;  %v589_v3 = vsel %vm560_vm1, %v524_v1, -inf }
 0x130   :  { %v726_v4 = vrot.slane %v725_v62, 1  ;;  %v729_v5 = vrot.slane %v728_v2, 4  ;;  %2091 = vpow2.f32 %v693_v63  ;;  %v587_v6 = vrot.slane %v586_v0, 1 }
 0x131   :  { %v590_v7 = vrot.slane %v589_v3, 4 }
 0x132   :  { %v727_v8 = vadd.f32 %v726_v4, %v725_v62  ;;  %v730_v9 = vadd.f32 %v729_v5, %v728_v2  ;;  %v588_v10 = vmax.f32 %v586_v0, %v587_v6 }
 0x133   :  { %v591_v11 = vmax.f32 %v589_v3, %v590_v7 }
 0x134   :  { %2093 = vrcp.f32 %v727_v8  ;;  %v731_v12 = vrot.slane %v730_v9, 2  ;;  %v676_v13 = vsub.f32 %v521_v47, %v588_v10  ;;  %v842_v37 = vand.u32 2147483647, %v727_v8 }
 0x135   :  { %v592_v14 = vrot.slane %v591_v11, 2  ;;  %v844_v42 = vand.u32 2147483648, %v727_v8  ;;  %vm838_vm3 = vweird.f32 %v727_v8 }
 0x136   :  { %v2354_v15 = vpop.eup %2091  ;;  %v732_v16 = vadd.f32 %v731_v12, %v730_v9  ;;  %v695_v17 = vmul.f32 1.442695, %v676_v13  ;;  %v527_v18 = vpop.f32.mrf.mxu3  ;;  %vm843_vm5 = vcmp.eq.f32.partialorder %v842_v37, 8.507059e+37 }
 0x137   :  { %v735_v19 = vsel %vm560_vm1, %v2354_v15, 0.0  ;;  %v593_v20 = vmax.f32 %v591_v11, %v592_v14  ;;  %v596_v21 = vsel %vm560_vm1, %v527_v18, -inf  ;;  %v845_v59 = vor.u32 1.1754944e-38, %v844_v42 }
 0x138   :  { %v733_v22 = vrot.slane %v732_v16, 1  ;;  %v736_v23 = vrot.slane %v735_v19, 4  ;;  %2095 = vpow2.f32 %v695_v17  ;;  %v597_v24 = vrot.slane %v596_v21, 4  ;;  %v2058_v17 = vld [vmem:[%s2858_s2 + $0x18] sm:$0xff] }
 0x139   :  { %v594_v26 = vrot.slane %v593_v20, 1  ;;  %1969 = vmatmul.msk.bf16.gmra.mxu2 %vm103_vm0, %v2058_v17 }
 0x13a   :  { %v2094_v27 = vpop.eup %2093  ;;  %v2362_v28 = vadd.f32 %v733_v22, %v732_v16  ;;  %v737_v29 = vadd.f32 %v736_v23, %v735_v19  ;;  %v598_v30 = vmax.f32 %v596_v21, %v597_v24 }
 0x13b   :  { %v595_v31 = vmax.f32 %v593_v20, %v594_v26  ;;  %v834_v32 = vmul.f32 %v2094_v27, %v727_v8  ;;  %vm839_vm2 = vweird.f32 %v2094_v27 }
 0x13c   :  { %2097 = vrcp.f32 %v2362_v28  ;;  %v738_v33 = vrot.slane %v737_v29, 2  ;;  %v599_v34 = vrot.slane %v598_v30, 2  ;;  %vm840_vm4 = vmor %vm838_vm3, %vm839_vm2  ;;  %v857_v3 = vand.u32 2147483647, %v2362_v28 }
 0x13d   :  { %v677_v35 = vsub.f32 %v524_v1, %v595_v31  ;;  %v835_v36 = vsub.f32 1.0, %v834_v32  ;;  %v859_v4 = vand.u32 2147483648, %v2362_v28  ;;  %vm853_vm7 = vweird.f32 %v2362_v28 }
 0x13e   :  { %v2366_v38 = vpop.eup %2095  ;;  %v739_v39 = vadd.f32 %v738_v33, %v737_v29  ;;  %v600_v40 = vmax.f32 %v598_v30, %v599_v34  ;;  %v2368_v41 = vpop.f32.mrf.mxu3  ;;  %vm858_vm9 = vcmp.eq.f32.partialorder %v857_v3, 8.507059e+37 }
 0x13f   :  { %v742_v43 = vsel %vm560_vm1, %v2366_v38, 0.0  ;;  %v697_v45 = vmul.f32 1.442695, %v677_v35  ;;  %v603_v46 = vsel %vm560_vm1, %v2368_v41, -inf  ;;  %v836_v47 = vmul.f32 %v2094_v27, %v835_v36 }
 0x140   :  { %v740_v48 = vrot.slane %v739_v39, 1  ;;  %v743_v49 = vrot.slane %v742_v43, 4  ;;  %v601_v50 = vrot.slane %v600_v40, 1  ;;  %v604_v51 = vrot.slane %v603_v46, 4 }
 0x141   :  { %2099 = vpow2.f32 %v697_v45  ;;  %v837_v52 = vadd.f32 %v2094_v27, %v836_v47  ;;  %v860_v23 = vor.u32 1.1754944e-38, %v859_v4 }
 0x142   :  { %v2098_v53 = vpop.eup %2097  ;;  %v2374_v54 = vadd.f32 %v740_v48, %v739_v39  ;;  %v744_v55 = vadd.f32 %v743_v49, %v742_v43  ;;  %v602_v56 = vmax.f32 %v600_v40, %v601_v50  ;;  %v605_v57 = vmax.f32 %v603_v46, %v604_v51 }
 0x143   :  { %v841_v58 = vsel %vm840_vm4, %v2094_v27, %v837_v52  ;;  %v849_v60 = vmul.f32 %v2098_v53, %v2362_v28  ;;  %vm854_vm6 = vweird.f32 %v2098_v53 }
 0x144   :  { %2101 = vrcp.f32 %v2374_v54  ;;  %v745_v62 = vrot.slane %v744_v55, 2  ;;  %v678_v63 = vsub.f32 %v527_v18, %v602_v56  ;;  %v606_v0 = vrot.slane %v605_v57, 2  ;;  %vm855_vm8 = vmor %vm853_vm7, %vm854_vm6 }
 0x145   :  { %v846_v1 = vsel %vm843_vm5, %v845_v59, %v841_v58  ;;  %v850_v2 = vsub.f32 1.0, %v849_v60  ;;  %v872_v28 = vand.u32 2147483647, %v2374_v54  ;;  %v874_v39 = vand.u32 2147483648, %v2374_v54 }
 0x146   :  { %v746_v5 = vadd.f32 %v745_v62, %v744_v55  ;;  %v699_v6 = vmul.f32 1.442695, %v678_v63  ;;  %v607_v7 = vmax.f32 %v605_v57, %v606_v0  ;;  %v2381_v8 = vpop.f32.mrf.mxu3  ;;  %v847_v9 = vmul.f32 %v2337_v44, %v846_v1 }
 0x147   :  { %v2384_v10 = vpop.eup %2099  ;;  %v610_v11 = vsel %vm560_vm1, %v2381_v8, -inf  ;;  %v851_v12 = vmul.f32 %v2098_v53, %v850_v2  ;;  %vm868_vm11 = vweird.f32 %v2374_v54  ;;  %vm2414_vm12 = vcmp.eq.f32.partialorder %v872_v28, 8.507059e+37 }
 0x148   :  { %v747_v13 = vrot.slane %v746_v5, 1  ;;  %v749_v14 = vsel %vm560_vm1, %v2384_v10, 0.0  ;;  %2103 = vpow2.f32 %v699_v6  ;;  %v608_v16 = vrot.slane %v607_v7, 1  ;;  %1990 = vmatmul.msk.f32.vlgmr.msrb.gmra.mxu0 %vm560_vm1, %v847_v9 }
 0x149   :  { %v750_v44 = vrot.slane %v749_v14, 4  ;;  %v611_v18 = vrot.slane %v610_v11, 4  ;;  %v852_v19 = vadd.f32 %v2098_v53, %v851_v12  ;;  %v875_v55 = vor.u32 1.1754944e-38, %v874_v39 }
 0x14a   :  { %v2102_v20 = vpop.eup %2101  ;;  %v2395_v21 = vadd.f32 %v747_v13, %v746_v5  ;;  %v609_v22 = vmax.f32 %v607_v7, %v608_v16 }
 0x14b   :  { %v751_v24 = vadd.f32 %v750_v44, %v749_v14  ;;  %v612_v25 = vmax.f32 %v610_v11, %v611_v18  ;;  %v856_v26 = vsel %vm855_vm8, %v2098_v53, %v852_v19  ;;  %v864_v27 = vmul.f32 %v2102_v20, %v2374_v54 }
 0x14c   :  { %2105 = vrcp.f32 %v2395_v21  ;;  %v679_v29 = vsub.f32 %v2368_v41, %v609_v22  ;;  %v861_v30 = vsel %vm858_vm9, %v860_v23, %v856_v26  ;;  %vm869_vm10 = vweird.f32 %v2102_v20  ;;  %v2059_v22 = vld [vmem:[%s2858_s2 + $0x20] sm:$0xff] }
 0x14d   :  { %v752_v31 = vrot.slane %v751_v24, 2  ;;  %v613_v32 = vrot.slane %v612_v25, 2  ;;  %v862_v33 = vmul.f32 %v2349_v61, %v861_v30  ;;  %v865_v34 = vsub.f32 1.0, %v864_v27  ;;  %vm870_vm13 = vmor %vm868_vm11, %vm869_vm10  ;;  %1970 = vmatmul.msk.bf16.gmra.mxu2 %vm103_vm0, %v2059_v22 }
 0x14e   :  { %v2403_v35 = vpop.eup %2103  ;;  %v701_v36 = vmul.f32 1.442695, %v679_v29  ;;  %v2405_v37 = vpop.f32.mrf.mxu3  ;;  %v887_v59 = vand.u32 2147483647, %v2395_v21  ;;  %v889_v63 = vand.u32 2147483648, %v2395_v21  ;;  %vm883_vm15 = vweird.f32 %v2395_v21 }
 0x14f   :  { %v753_v40 = vadd.f32 %v752_v31, %v751_v24  ;;  %v756_v41 = vsel %vm560_vm1, %v2403_v35, 0.0  ;;  %v614_v42 = vmax.f32 %v612_v25, %v613_v32  ;;  %v617_v43 = vsel %vm560_vm1, %v2405_v37, -inf }
 0x150   :  { %v757_v45 = vrot.slane %v756_v41, 4  ;;  %2107 = vpow2.f32 %v701_v36  ;;  %v618_v61 = vrot.slane %v617_v43, 4  ;;  %1991 = vmatmul.msk.f32.gmra.mxu0 %vm560_vm1, %v862_v33  ;;  %v866_v46 = vmul.f32 %v2102_v20, %v865_v34 }
 0x151   :  { %v754_v47 = vrot.slane %v753_v40, 1  ;;  %v615_v48 = vrot.slane %v614_v42, 1  ;;  %vm888_vm3 = vcmp.eq.f32.partialorder %v887_v59, 8.507059e+37  ;;  %v890_v25 = vor.u32 1.1754944e-38, %v889_v63 }
 0x152   :  { %v2106_v50 = vpop.eup %2105  ;;  %v758_v51 = vadd.f32 %v757_v45, %v756_v41  ;;  %v619_v52 = vmax.f32 %v617_v43, %v618_v61  ;;  %v867_v53 = vadd.f32 %v2102_v20, %v866_v46 }
 0x153   :  { %v2418_v56 = vadd.f32 %v754_v47, %v753_v40  ;;  %v616_v57 = vmax.f32 %v614_v42, %v615_v48  ;;  %v879_v58 = vmul.f32 %v2106_v50, %v2395_v21  ;;  %vm884_vm14 = vweird.f32 %v2106_v50 }
 0x154   :  { %v759_v60 = vrot.slane %v758_v51, 2  ;;  %v620_v54 = vrot.slane %v619_v52, 2  ;;  %v871_v62 = vsel %vm870_vm13, %v2102_v20, %v867_v53  ;;  %vm885_vm2 = vmor %vm883_vm15, %vm884_vm14 }
 0x155   :  { %2109 = vrcp.f32 %v2418_v56  ;;  %v680_v0 = vsub.f32 %v2381_v8, %v616_v57  ;;  %v876_v1 = vsel %vm2414_vm12, %v875_v55, %v871_v62  ;;  %v880_v2 = vsub.f32 1.0, %v879_v58 }
 0x156   :  { %v2428_v3 = vpop.eup %2107  ;;  %v760_v4 = vadd.f32 %v759_v60, %v758_v51  ;;  %v621_v5 = vmax.f32 %v619_v52, %v620_v54  ;;  %v2430_v6 = vpop.f32.mrf.mxu3  ;;  %v877_v7 = vmul.f32 %v2354_v15, %v876_v1  ;;  %v904_v41 = vand.u32 2147483648, %v2418_v56 }
 0x157   :  { %v763_v9 = vsel %vm560_vm1, %v2428_v3, 0.0  ;;  %v703_v11 = vmul.f32 1.442695, %v680_v0  ;;  %v624_v8 = vsel %vm560_vm1, %v2430_v6, -inf  ;;  %v881_v12 = vmul.f32 %v2106_v50, %v880_v2 }
 0x158   :  { %v761_v13 = vrot.slane %v760_v4, 1  ;;  %v764_v14 = vrot.slane %v763_v9, 4  ;;  %v622_v16 = vrot.slane %v621_v5, 1  ;;  %v625_v17 = vrot.slane %v624_v8, 4  ;;  %1992 = vmatmul.msk.f32.gmra.mxu0 %vm560_vm1, %v877_v7 }
 0x159   :  { %2111 = vpow2.f32 %v703_v11  ;;  %v882_v44 = vadd.f32 %v2106_v50, %v881_v12  ;;  %vm898_vm5 = vweird.f32 %v2418_v56  ;;  %v905_v57 = vor.u32 1.1754944e-38, %v904_v41 }
 0x15a   :  { %v2439_v15 = vadd.f32 %v761_v13, %v760_v4  ;;  %v765_v18 = vadd.f32 %v764_v14, %v763_v9  ;;  %v623_v19 = vmax.f32 %v621_v5, %v622_v16  ;;  %v626_v20 = vmax.f32 %v624_v8, %v625_v17 }
 0x15b   :  { %v2110_v23 = vpop.eup %2109  ;;  %v886_v24 = vsel %vm885_vm2, %v2106_v50, %v882_v44 }
 0x15c   :  { %2113 = vrcp.f32 %v2439_v15  ;;  %v766_v26 = vrot.slane %v765_v18, 2  ;;  %v681_v21 = vsub.f32 %v2405_v37, %v623_v19  ;;  %v627_v27 = vrot.slane %v626_v20, 2 }
 0x15d   :  { %v891_v29 = vsel %vm888_vm3, %v890_v25, %v886_v24  ;;  %v894_v30 = vmul.f32 %v2110_v23, %v2418_v56  ;;  %v902_v37 = vand.u32 2147483647, %v2418_v56  ;;  %vm899_vm4 = vweird.f32 %v2110_v23 }
 0x15e   :  { %v767_v28 = vadd.f32 %v766_v26, %v765_v18  ;;  %v705_v31 = vmul.f32 1.442695, %v681_v21  ;;  %v628_v32 = vmax.f32 %v626_v20, %v627_v27  ;;  %v2449_v33 = vpop.f32.mrf.mxu3  ;;  %v892_v34 = vmul.f32 %v2366_v38, %v891_v29  ;;  %vm900_vm6 = vmor %vm898_vm5, %vm899_vm4  ;;  %v2060_v18 = vld [vmem:[%s2858_s2 + $0x28] sm:$0xff] }
 0x15f   :  { %v2452_v36 = vpop.eup %2111  ;;  %v631_v39 = vsel %vm560_vm1, %v2449_v33, -inf  ;;  %v895_v40 = vsub.f32 1.0, %v894_v30  ;;  %vm903_vm7 = vcmp.eq.f32.partialorder %v902_v37, 8.507059e+37  ;;  %v917_v1 = vand.u32 2147483647, %v2439_v15  ;;  %1971 = vmatmul.msk.bf16.gmra.mxu2 %vm103_vm0, %v2060_v18 }
 0x160   :  { %v768_v42 = vrot.slane %v767_v28, 1  ;;  %v770_v43 = vsel %vm560_vm1, %v2452_v36, 0.0  ;;  %2115 = vpow2.f32 %v705_v31  ;;  %v629_v45 = vrot.slane %v628_v32, 1  ;;  %1993 = vmatmul.msk.f32.gmra.mxu0 %vm560_vm1, %v892_v34 }
 0x161   :  { %v771_v61 = vrot.slane %v770_v43, 4  ;;  %v632_v38 = vrot.slane %v631_v39, 4  ;;  %v896_v46 = vmul.f32 %v2110_v23, %v895_v40  ;;  %v919_v2 = vand.u32 2147483648, %v2439_v15 }
 0x162   :  { %v2114_v47 = vpop.eup %2113  ;;  %v2461_v48 = vadd.f32 %v768_v42, %v767_v28  ;;  %v630_v49 = vmax.f32 %v628_v32, %v629_v45  ;;  %vm913_vm9 = vweird.f32 %v2439_v15  ;;  %vm918_vm11 = vcmp.eq.f32.partialorder %v917_v1, 8.507059e+37 }
 0x163   :  { %v772_v50 = vadd.f32 %v771_v61, %v770_v43  ;;  %v633_v51 = vmax.f32 %v631_v39, %v632_v38  ;;  %v897_v52 = vadd.f32 %v2110_v23, %v896_v46  ;;  %v909_v53 = vmul.f32 %v2114_v47, %v2439_v15 }
 0x164   :  { %2117 = vrcp.f32 %v2461_v48  ;;  %v682_v55 = vsub.f32 %v2430_v6, %v630_v49  ;;  %vm914_vm8 = vweird.f32 %v2114_v47  ;;  %v920_v25 = vor.u32 1.1754944e-38, %v919_v2 }
 0x165   :  { %v773_v58 = vrot.slane %v772_v50, 2  ;;  %v634_v59 = vrot.slane %v633_v51, 2  ;;  %v901_v60 = vsel %vm900_vm6, %v2110_v23, %v897_v52  ;;  %v910_v54 = vsub.f32 1.0, %v909_v53  ;;  %vm915_vm10 = vmor %vm913_vm9, %vm914_vm8 }
 0x166   :  { %v2467_v62 = vpop.eup %2115  ;;  %v707_v63 = vmul.f32 1.442695, %v682_v55  ;;  %v2469_v56 = vpop.f32.mrf.mxu3  ;;  %v906_v0 = vsel %vm903_vm7, %v905_v57, %v901_v60  ;;  %v934_v32 = vand.u32 2147483648, %v2461_v48  ;;  %v932_v61 = vand.u32 2147483647, %v2461_v48 }
 0x167   :  { %v774_v4 = vadd.f32 %v773_v58, %v772_v50  ;;  %v777_v5 = vsel %vm560_vm1, %v2467_v62, 0.0  ;;  %v635_v6 = vmax.f32 %v633_v51, %v634_v59  ;;  %v638_v7 = vsel %vm560_vm1, %v2469_v56, -inf }
 0x168   :  { %v778_v9 = vrot.slane %v777_v5, 4  ;;  %2119 = vpow2.f32 %v707_v63  ;;  %v639_v11 = vrot.slane %v638_v7, 4  ;;  %v907_v8 = vmul.f32 %v2384_v10, %v906_v0 }
 0x169   :  { %v775_v12 = vrot.slane %v774_v4, 1  ;;  %v636_v13 = vrot.slane %v635_v6, 1  ;;  %v911_v14 = vmul.f32 %v2114_v47, %v910_v54  ;;  %vm928_vm13 = vweird.f32 %v2461_v48 }
 0x16a   :  { %v2118_v16 = vpop.eup %2117  ;;  %v779_v17 = vadd.f32 %v778_v9, %v777_v5  ;;  %v640_v44 = vmax.f32 %v638_v7, %v639_v11  ;;  %1994 = vmatmul.msk.f32.gmra.mxu0 %vm560_vm1, %v907_v8  ;;  %vm933_vm15 = vcmp.eq.f32.partialorder %v932_v61, 8.507059e+37 }
 0x16b   :  { %v2483_v19 = vadd.f32 %v775_v12, %v774_v4  ;;  %v637_v20 = vmax.f32 %v635_v6, %v636_v13  ;;  %v912_v22 = vadd.f32 %v2114_v47, %v911_v14  ;;  %v924_v10 = vmul.f32 %v2118_v16, %v2461_v48 }
 0x16c   :  { %v780_v23 = vrot.slane %v779_v17, 2  ;;  %v641_v24 = vrot.slane %v640_v44, 2  ;;  %vm929_vm12 = vweird.f32 %v2118_v16 }
 0x16d   :  { %2121 = vrcp.f32 %v2483_v19  ;;  %v683_v15 = vsub.f32 %v2449_v33, %v637_v20  ;;  %v916_v26 = vsel %vm915_vm10, %v2114_v47, %v912_v22  ;;  %v925_v21 = vsub.f32 1.0, %v924_v10  ;;  %vm930_vm14 = vmor %vm928_vm13, %vm929_vm12  ;;  %v2061_v20 = vld [vmem:[%s2858_s2 + $0x30] sm:$0xff] }
 0x16e   :  { %v2489_v27 = vpop.eup %2119  ;;  %v781_v29 = vadd.f32 %v780_v23, %v779_v17  ;;  %v642_v30 = vmax.f32 %v640_v44, %v641_v24  ;;  %v2491_v28 = vpop.f32.mrf.mxu3  ;;  %v921_v31 = vsel %vm918_vm11, %v920_v25, %v916_v26  ;;  %v947_v59 = vand.u32 2147483647, %v2483_v19 }
 0x16f   :  { %v784_v34 = vsel %vm560_vm1, %v2489_v27, 0.0  ;;  %v709_v39 = vmul.f32 1.442695, %v683_v15  ;;  %v645_v40 = vsel %vm560_vm1, %v2491_v28, -inf  ;;  %v922_v33 = vmul.f32 %v2403_v35, %v921_v31  ;;  %1972 = vmatmul.msk.bf16.gmra.mxu2 %vm103_vm0, %v2061_v20 }
 0x170   :  { %v782_v37 = vrot.slane %v781_v29, 1  ;;  %v785_v41 = vrot.slane %v784_v34, 4  ;;  %v643_v42 = vrot.slane %v642_v30, 1  ;;  %v646_v43 = vrot.slane %v645_v40, 4 }
 0x171   :  { %2123 = vpow2.f32 %v709_v39  ;;  %v926_v45 = vmul.f32 %v2118_v16, %v925_v21  ;;  %v935_v35 = vor.u32 1.1754944e-38, %v934_v32  ;;  %v949_v5 = vand.u32 2147483648, %v2483_v19 }
 0x172   :  { %v2500_v38 = vadd.f32 %v782_v37, %v781_v29  ;;  %v786_v46 = vadd.f32 %v785_v41, %v784_v34  ;;  %v644_v47 = vmax.f32 %v642_v30, %v643_v42  ;;  %v647_v49 = vmax.f32 %v645_v40, %v646_v43  ;;  %1995 = vmatmul.msk.f32.gmra.mxu0 %vm560_vm1, %v922_v33 }
 0x173   :  { %v2122_v50 = vpop.eup %2121  ;;  %v927_v51 = vadd.f32 %v2118_v16, %v926_v45  ;;  %vm943_vm3 = vweird.f32 %v2483_v19  ;;  %vm948_vm5 = vcmp.eq.f32.partialorder %v947_v59, 8.507059e+37  ;;  %v950_v10 = vor.u32 1.1754944e-38, %v949_v5 }
 0x174   :  { %2125 = vrcp.f32 %v2500_v38  ;;  %v787_v52 = vrot.slane %v786_v46, 2  ;;  %v684_v53 = vsub.f32 %v2469_v56, %v644_v47  ;;  %v648_v55 = vrot.slane %v647_v49, 2 }
 0x175   :  { %v931_v57 = vsel %vm930_vm14, %v2118_v16, %v927_v51  ;;  %v939_v58 = vmul.f32 %v2122_v50, %v2483_v19  ;;  %vm944_vm2 = vweird.f32 %v2122_v50  ;;  %v962_v30 = vand.u32 2147483647, %v2500_v38 }
 0x176   :  { %v788_v60 = vadd.f32 %v787_v52, %v786_v46  ;;  %v711_v54 = vmul.f32 1.442695, %v684_v53  ;;  %v649_v63 = vmax.f32 %v647_v49, %v648_v55  ;;  %v2509_v0 = vpop.f32.mrf.mxu3  ;;  %v936_v48 = vsel %vm933_vm15, %v935_v35, %v931_v57  ;;  %vm945_vm4 = vmor %vm943_vm3, %vm944_vm2 }
 0x177   :  { %v2511_v1 = vpop.eup %2123  ;;  %v652_v56 = vsel %vm560_vm1, %v2509_v0, -inf  ;;  %v937_v2 = vmul.f32 %v2428_v3, %v936_v48  ;;  %v940_v4 = vsub.f32 1.0, %v939_v58  ;;  %v964_v31 = vand.u32 2147483648, %v2500_v38 }
 0x178   :  { %v789_v6 = vrot.slane %v788_v60, 1  ;;  %v791_v7 = vsel %vm560_vm1, %v2511_v1, 0.0  ;;  %2127 = vpow2.f32 %v711_v54  ;;  %v650_v9 = vrot.slane %v649_v63, 1 }
 0x179   :  { %v792_v11 = vrot.slane %v791_v7, 4  ;;  %v653_v8 = vrot.slane %v652_v56, 4  ;;  %v941_v12 = vmul.f32 %v2122_v50, %v940_v4  ;;  %vm958_vm7 = vweird.f32 %v2500_v38 }
 0x17a   :  { %v2126_v13 = vpop.eup %2125  ;;  %v2519_v14 = vadd.f32 %v789_v6, %v788_v60  ;;  %v651_v16 = vmax.f32 %v649_v63, %v650_v9  ;;  %1996 = vmatmul.msk.f32.gmra.mxu0 %vm560_vm1, %v937_v2  ;;  %vm963_vm9 = vcmp.eq.f32.partialorder %v962_v30, 8.507059e+37 }
 0x17b   :  { %v793_v3 = vadd.f32 %v792_v11, %v791_v7  ;;  %v654_v17 = vmax.f32 %v652_v56, %v653_v8  ;;  %v942_v44 = vadd.f32 %v2122_v50, %v941_v12  ;;  %v954_v18 = vmul.f32 %v2126_v13, %v2500_v38 }
 0x17c   :  { %2129 = vrcp.f32 %v2519_v14  ;;  %v685_v22 = vsub.f32 %v2491_v28, %v651_v16  ;;  %vm959_vm6 = vweird.f32 %v2126_v13  ;;  %v979_v63 = vand.u32 2147483648, %v2519_v14 }
 0x17d   :  { %v794_v23 = vrot.slane %v793_v3, 2  ;;  %v655_v24 = vrot.slane %v654_v17, 2  ;;  %v946_v25 = vsel %vm945_vm4, %v2122_v50, %v942_v44  ;;  %v955_v19 = vsub.f32 1.0, %v954_v18  ;;  %vm960_vm8 = vmor %vm958_vm7, %vm959_vm6  ;;  %v2062_v44 = vld [vmem:[%s2858_s2 + $0x38] sm:$0xff] }
 0x17e   :  { %v2530_v15 = vpop.eup %2127  ;;  %v713_v26 = vmul.f32 1.442695, %v685_v22  ;;  %v2532_v21 = vpop.f32.mrf.mxu3  ;;  %v951_v29 = vsel %vm948_vm5, %v950_v10, %v946_v25  ;;  %v977_v11 = vand.u32 2147483647, %v2519_v14  ;;  %vm973_vm11 = vweird.f32 %v2519_v14 }
 0x17f   :  { %v795_v28 = vadd.f32 %v794_v23, %v793_v3  ;;  %v798_v32 = vsel %vm560_vm1, %v2530_v15, 0.0  ;;  %v656_v34 = vmax.f32 %v654_v17, %v655_v24  ;;  %v659_v39 = vsel %vm560_vm1, %v2532_v21, -inf  ;;  %1973 = vmatmul.msk.bf16.gmra.mxu2 %vm103_vm0, %v2062_v44 }
 0x180   :  { %v799_v40 = vrot.slane %v798_v32, 4  ;;  %2131 = vpow2.f32 %v713_v26  ;;  %v660_v33 = vrot.slane %v659_v39, 4  ;;  %v952_v37 = vmul.f32 %v2452_v36, %v951_v29 }
 0x181   :  { %v796_v41 = vrot.slane %v795_v28, 1  ;;  %v657_v42 = vrot.slane %v656_v34, 1  ;;  %v956_v43 = vmul.f32 %v2126_v13, %v955_v19  ;;  %v965_v36 = vor.u32 1.1754944e-38, %v964_v31 }
 0x182   :  { %v2130_v45 = vpop.eup %2129  ;;  %v800_v61 = vadd.f32 %v799_v40, %v798_v32  ;;  %v661_v46 = vmax.f32 %v659_v39, %v660_v33  ;;  %1997 = vmatmul.msk.f32.gmra.mxu0 %vm560_vm1, %v952_v37  ;;  %vm978_vm13 = vcmp.eq.f32.partialorder %v977_v11, 8.507059e+37 }
 0x183   :  { %v2543_v47 = vadd.f32 %v796_v41, %v795_v28  ;;  %v658_v49 = vmax.f32 %v656_v34, %v657_v42  ;;  %v957_v50 = vadd.f32 %v2126_v13, %v956_v43  ;;  %v969_v51 = vmul.f32 %v2130_v45, %v2519_v14 }
 0x184   :  { %v801_v35 = vrot.slane %v800_v61, 2  ;;  %v662_v52 = vrot.slane %v661_v46, 2  ;;  %vm974_vm10 = vweird.f32 %v2130_v45 }
 0x185   :  { %2133 = vrcp.f32 %v2543_v47  ;;  %v686_v53 = vsub.f32 %v2509_v0, %v658_v49  ;;  %v961_v55 = vsel %vm960_vm8, %v2126_v13, %v957_v50  ;;  %v970_v57 = vsub.f32 1.0, %v969_v51  ;;  %vm975_vm12 = vmor %vm973_vm11, %vm974_vm10 }
 0x186   :  { %v2548_v58 = vpop.eup %2131  ;;  %v802_v38 = vadd.f32 %v801_v35, %v800_v61  ;;  %v663_v59 = vmax.f32 %v661_v46, %v662_v52  ;;  %v2550_v60 = vpop.f32.mrf.mxu3  ;;  %v966_v54 = vsel %vm963_vm9, %v965_v36, %v961_v55  ;;  %v994_v31 = vand.u32 2147483648, %v2543_v47 }
 0x187   :  { %v805_v48 = vsel %vm560_vm1, %v2548_v58, 0.0  ;;  %v715_v56 = vmul.f32 1.442695, %v686_v53  ;;  %v666_v2 = vsel %vm560_vm1, %v2550_v60, -inf  ;;  %v967_v0 = vmul.f32 %v2467_v62, %v966_v54 }
 0x188   :  { %v803_v4 = vrot.slane %v802_v38, 1  ;;  %v806_v5 = vrot.slane %v805_v48, 4  ;;  %v664_v6 = vrot.slane %v663_v59, 1  ;;  %v667_v7 = vrot.slane %v666_v2, 4 }
 0x189   :  { %2135 = vpow2.f32 %v715_v56  ;;  %v971_v9 = vmul.f32 %v2130_v45, %v970_v57  ;;  %v980_v62 = vor.u32 1.1754944e-38, %v979_v63  ;;  %vm988_vm15 = vweird.f32 %v2543_v47 }
 0x18a   :  { %v2559_v8 = vadd.f32 %v803_v4, %v802_v38  ;;  %v807_v12 = vadd.f32 %v806_v5, %v805_v48  ;;  %v665_v13 = vmax.f32 %v663_v59, %v664_v6  ;;  %v668_v16 = vmax.f32 %v666_v2, %v667_v7  ;;  %1998 = vmatmul.msk.f32.gmra.mxu0 %vm560_vm1, %v967_v0 }
 0x18b   :  { %v2134_v3 = vpop.eup %2133  ;;  %v972_v17 = vadd.f32 %v2130_v45, %v971_v9  ;;  %v995_v61 = vor.u32 1.1754944e-38, %v994_v31 }
 0x18c   :  { %2137 = vrcp.f32 %v2559_v8  ;;  %v808_v18 = vrot.slane %v807_v12, 2  ;;  %v687_v20 = vsub.f32 %v2532_v21, %v665_v13  ;;  %v669_v22 = vrot.slane %v668_v16, 2 }
 0x18d   :  { %v976_v10 = vsel %vm975_vm12, %v2130_v45, %v972_v17  ;;  %v984_v23 = vmul.f32 %v2134_v3, %v2543_v47  ;;  %v992_v21 = vand.u32 2147483647, %v2543_v47  ;;  %vm989_vm14 = vweird.f32 %v2134_v3 }
 0x18e   :  { %v809_v14 = vadd.f32 %v808_v18, %v807_v12  ;;  %v717_v24 = vmul.f32 1.442695, %v687_v20  ;;  %v670_v25 = vmax.f32 %v668_v16, %v669_v22  ;;  %v981_v19 = vsel %vm978_vm13, %v980_v62, %v976_v10  ;;  %vm990_vm2 = vmor %vm988_vm15, %vm989_vm14 }
 0x18f   :  { %v2571_v26 = vpop.eup %2135  ;;  %v982_v29 = vmul.f32 %v2489_v27, %v981_v19  ;;  %v985_v30 = vsub.f32 1.0, %v984_v23  ;;  %vm993_vm3 = vcmp.eq.f32.partialorder %v992_v21, 8.507059e+37  ;;  %v1007_v51 = vand.u32 2147483647, %v2559_v8 }
 0x190   :  { %v810_v28 = vrot.slane %v809_v14, 1  ;;  %v812_v32 = vsel %vm560_vm1, %v2571_v26, 0.0  ;;  %2139 = vpow2.f32 %v717_v24  ;;  %v671_v34 = vrot.slane %v670_v25, 1  ;;  %v2604_v24 = vpop.f32.mrf.mxu2 }
 0x191   :  { %v813_v39 = vrot.slane %v812_v32, 4  ;;  %v986_v40 = vmul.f32 %v2134_v3, %v985_v30  ;;  %v1009_v47 = vand.u32 2147483648, %v2559_v8  ;;  %vm1003_vm5 = vweird.f32 %v2559_v8 }
 0x192   :  { %v2138_v33 = vpop.eup %2137  ;;  %v2578_v37 = vadd.f32 %v810_v28, %v809_v14  ;;  %v672_v41 = vmax.f32 %v670_v25, %v671_v34  ;;  %1999 = vmatmul.msk.f32.gmra.mxu0 %vm560_vm1, %v982_v29  ;;  %vm1008_vm7 = vcmp.eq.f32.partialorder %v1007_v51, 8.507059e+37 }
 0x193   :  { %v814_v27 = vadd.f32 %v813_v39, %v812_v32  ;;  %v987_v42 = vadd.f32 %v2134_v3, %v986_v40  ;;  %v999_v43 = vmul.f32 %v2138_v33, %v2559_v8  ;;  %vm1004_vm4 = vweird.f32 %v2138_v33 }
 0x194   :  { %2141 = vrcp.f32 %v2578_v37  ;;  %v688_v45 = vsub.f32 %v2550_v60, %v672_v41  ;;  %vm1005_vm6 = vmor %vm1003_vm5, %vm1004_vm4  ;;  %v1010_v56 = vor.u32 1.1754944e-38, %v1009_v47  ;;  %v1024_v8 = vand.u32 2147483648, %v2578_v37 }
 0x195   :  { %v815_v46 = vrot.slane %v814_v27, 2  ;;  %v991_v49 = vsel %vm990_vm2, %v2134_v3, %v987_v42  ;;  %v1000_v50 = vsub.f32 1.0, %v999_v43  ;;  %v1022_v16 = vand.u32 2147483647, %v2578_v37 }
 0x196   :  { %v2586_v35 = vpop.eup %2139  ;;  %v719_v52 = vmul.f32 1.442695, %v688_v45  ;;  %v996_v36 = vsel %vm993_vm3, %v995_v61, %v991_v49  ;;  %vm1018_vm9 = vweird.f32 %v2578_v37 }
 0x197   :  { %v816_v53 = vadd.f32 %v815_v46, %v814_v27  ;;  %v819_v55 = vsel %vm560_vm1, %v2586_v35, 0.0  ;;  %v997_v57 = vmul.f32 %v2511_v1, %v996_v36  ;;  %v1001_v38 = vmul.f32 %v2138_v33, %v1000_v50 }
 0x198   :  { %v820_v59 = vrot.slane %v819_v55, 4  ;;  %2143 = vpow2.f32 %v719_v52  ;;  %vm1023_vm11 = vcmp.eq.f32.partialorder %v1022_v16, 8.507059e+37  ;;  %v341_v43 = vpop.f32.mrf.mxu2 }
 0x199   :  { %v817_v60 = vrot.slane %v816_v53, 1  ;;  %v1002_v54 = vadd.f32 %v2138_v33, %v1001_v38 }
 0x19a   :  { %v2142_v63 = vpop.eup %2141  ;;  %v821_v48 = vadd.f32 %v820_v59, %v819_v55  ;;  %2000 = vmatmul.msk.f32.gmra.mxu0 %vm560_vm1, %v997_v57 }
 0x19b   :  { %v818_v2 = vadd.f32 %v817_v60, %v816_v53  ;;  %v1006_v0 = vsel %vm1005_vm6, %v2138_v33, %v1002_v54  ;;  %v1014_v4 = vmul.f32 %v2142_v63, %v2578_v37  ;;  %vm1019_vm8 = vweird.f32 %v2142_v63 }
 0x19c   :  { %v822_v5 = vrot.slane %v821_v48, 2  ;;  %v1011_v1 = vsel %vm1008_vm7, %v1010_v56, %v1006_v0  ;;  %vm1020_vm10 = vmor %vm1018_vm9, %vm1019_vm8 }
 0x19d   :  { %2145 = vrcp.f32 %v818_v2  ;;  %v1015_v6 = vsub.f32 1.0, %v1014_v4  ;;  %v1012_v11 = vmul.f32 %v2530_v15, %v1011_v1  ;;  %v1025_v15 = vor.u32 1.1754944e-38, %v1024_v8 }
 0x19e   :  { %v2595_v7 = vpop.eup %2143  ;;  %v823_v9 = vadd.f32 %v822_v5, %v821_v48  ;;  %v1039_v30 = vand.u32 2147483648, %v818_v2  ;;  %v1037_v28 = vand.u32 2147483647, %v818_v2  ;;  %vm1033_vm13 = vweird.f32 %v818_v2 }
 0x19f   :  { %v826_v12 = vsel %vm560_vm1, %v2595_v7, 0.0  ;;  %v1016_v13 = vmul.f32 %v2142_v63, %v1015_v6 }
 0x1a0   :  { %v824_v3 = vrot.slane %v823_v9, 1  ;;  %v827_v17 = vrot.slane %v826_v12, 4  ;;  %v1040_v40 = vor.u32 1.1754944e-38, %v1039_v30  ;;  %vm1038_vm15 = vcmp.eq.f32.partialorder %v1037_v28, 8.507059e+37  ;;  %v344_v38 = vpop.f32.mrf.mxu2  ;;  %v1331_v28 = vld [vmem:[%s2860_s11] sm:$0xff] }
 0x1a1   :  { %v1017_v62 = vadd.f32 %v2142_v63, %v1016_v13 }
 0x1a2   :  { %v825_v44 = vadd.f32 %v824_v3, %v823_v9  ;;  %v828_v18 = vadd.f32 %v827_v17, %v826_v12  ;;  %2001 = vmatmul.msk.f32.gmra.mxu0 %vm560_vm1, %v1012_v11  ;;  %v1333_v9 = vld [vmem:[%s2860_s11 + $0x10] sm:$0xff] }
 0x1a3   :  { %v2146_v20 = vpop.eup %2145  ;;  %v1021_v22 = vsel %vm1020_vm10, %v2142_v63, %v1017_v62  ;;  %vm1353_vm10 = vcmask 1042434  }
 0x1a4   :  { %2147 = vrcp.f32 %v825_v44  ;;  %v829_v10 = vrot.slane %v828_v18, 2  ;;  %v1026_v23 = vsel %vm1023_vm11, %v1025_v15, %v1021_v22  ;;  %v1029_v14 = vmul.f32 %v2146_v20, %v818_v2 }
 0x1a5   :  { %v1027_v19 = vmul.f32 %v2548_v58, %v1026_v23  ;;  %vm1034_vm12 = vweird.f32 %v2146_v20  ;;  %v1054_v42 = vand.u32 2147483648, %v825_v44  ;;  %v1052_v61 = vand.u32 2147483647, %v825_v44 }
 0x1a6   :  { %v830_v25 = vadd.f32 %v829_v10, %v828_v18  ;;  %v1030_v29 = vsub.f32 1.0, %v1029_v14  ;;  %vm1035_vm14 = vmor %vm1033_vm13, %vm1034_vm12  ;;  %vm1048_vm3 = vweird.f32 %v825_v44  ;;  %vm1355_vm11 = vcmask 1043459  }
 0x1a7   :  { %v1055_v50 = vor.u32 1.1754944e-38, %v1054_v42  ;;  %vm1053_vm5 = vcmp.eq.f32.partialorder %v1052_v61, 8.507059e+37  ;;  %vm1357_vm12 = vcmask 1044484   ;;  %vm1359_vm13 = vcmask 1045509  }
 0x1a8   :  { %v831_v21 = vrot.slane %v830_v25, 1  ;;  %v1031_v31 = vmul.f32 %v2146_v20, %v1030_v29  ;;  %v346_v56 = vpop.f32.mrf.mxu2 }
 0x1aa   :  { %v2148_v32 = vpop.eup %2147  ;;  %v832_v34 = vadd.f32 %v831_v21, %v830_v25  ;;  %2002 = vmatmul.msk.f32.gmra.mxu0 %vm560_vm1, %v1027_v19  ;;  %v1032_v39 = vadd.f32 %v2146_v20, %v1031_v31 }
 0x1ab   :  { %v1044_v33 = vmul.f32 %v2148_v32, %v825_v44  ;;  %vm1049_vm2 = vweird.f32 %v2148_v32 }
 0x1ac   :  { %2149 = vrcp.f32 %v832_v34  ;;  %v1036_v37 = vsel %vm1035_vm14, %v2146_v20, %v1032_v39  ;;  %vm1050_vm4 = vmor %vm1048_vm3, %vm1049_vm2  ;;  %v1067_v57 = vand.u32 2147483647, %v832_v34  ;;  %vm1063_vm7 = vweird.f32 %v832_v34 }
 0x1ad   :  { %v1041_v41 = vsel %vm1038_vm15, %v1040_v40, %v1036_v37  ;;  %v1045_v58 = vsub.f32 1.0, %v1044_v33  ;;  %vm1361_vm14 = vcmask 1046534   ;;  %vm1363_vm15 = vcmask 1047559  }
 0x1ae   :  { %v1042_v27 = vmul.f32 %v2571_v26, %v1041_v41  ;;  %v1069_v26 = vand.u32 2147483648, %v832_v34  ;;  %vm1068_vm9 = vcmp.eq.f32.partialorder %v1067_v57, 8.507059e+37  ;;  %vm1438_vm2 = vcmask 1043456  }
 0x1af   :  { %v1046_v45 = vmul.f32 %v2148_v32, %v1045_v58 }
 0x1b0   :  { %v1070_v60 = vor.u32 1.1754944e-38, %v1069_v26  ;;  %v349_v0 = vpop.f32.mrf.mxu2 }
 0x1b1   :  { %v1047_v46 = vadd.f32 %v2148_v32, %v1046_v45 }
 0x1b2   :  { %v2150_v49 = vpop.eup %2149  ;;  %2003 = vmatmul.msk.f32.gmra.mxu0 %vm560_vm1, %v1042_v27 }
 0x1b3   :  { %v1051_v51 = vsel %vm1050_vm4, %v2148_v32, %v1047_v46  ;;  %v1059_v52 = vmul.f32 %v2150_v49, %v832_v34  ;;  %vm1064_vm6 = vweird.f32 %v2150_v49 }
 0x1b4   :  { %v1056_v36 = vsel %vm1053_vm5, %v1055_v50, %v1051_v51  ;;  %vm1065_vm8 = vmor %vm1063_vm7, %vm1064_vm6  ;;  %vm1431_vm6 = vcmask 31744  }
 0x1b5   :  { %v1060_v47 = vsub.f32 1.0, %v1059_v52  ;;  %v1057_v53 = vmul.f32 %v2586_v35, %v1056_v36  ;;  %v1334_v35 = vld [vmem:[%s2860_s11 + $0x18] sm:$0xff] }
 0x1b6   :  { %1388 = vmatpush.msrb.mxu1 %v1334_v35 }
 0x1b7   :  { %v1061_v55 = vmul.f32 %v2150_v49, %v1060_v47 }
 0x1b8   :  { %v351_v1 = vpop.f32.mrf.mxu2  ;;  %1389 = vmatpush.msrb.mxu1 %v1333_v9 }
 0x1b9   :  { %v1062_v59 = vadd.f32 %v2150_v49, %v1061_v55 }
 0x1ba   :  { %2004 = vmatmul.msk.f32.gmra.mxu0 %vm560_vm1, %v1057_v53 }
 0x1bb   :  { %v1066_v54 = vsel %vm1065_vm8, %v2150_v49, %v1062_v59 }
 0x1bc   :  { %v1071_v63 = vsel %vm1068_vm9, %v1070_v60, %v1066_v54 }
 0x1bd   :  { %v1072_v48 = vmul.f32 %v2595_v7, %v1071_v63 }
 0x1bf   :  { %2005 = vmatmul.msk.f32.vlgmr.msrb.gmra.mxu2 %vm560_vm1, %v1072_v48  ;;  %vm1351_vm1 = vcmask 1041409  }
 0x1c0   :  { %v354_v11 = vpop.f32.mrf.mxu2 }
 0x1c5   :  { %v1139_v2 = vpop.f32.mrf.mxu0 }
 0x1c6   :  { %v1187_v13 = vmul.f32 %v1139_v2, %v2604_v24  ;;  %v1332_v24 = vld [vmem:[%s2860_s11 + $0x8] sm:$0xff] }
 0x1c7   :  { %1390 = vmatpush.msrb.mxu1 %v1332_v24 }
 0x1c8   :  { %v356_v3 = vpop.f32.mrf.mxu2  ;;  %v1203_v18 = vsel %vm103_vm0, %v1187_v13, 0.0 }
 0x1c9   :  { %v1204_v25 = vrot.slane %v1203_v18, 4  ;;  %1391 = vmatpush.msrb.mxu1 %v1331_v28 }
 0x1cb   :  { %v1205_v39 = vadd.f32 %v1204_v25, %v1203_v18 }
 0x1cd   :  { %v1142_v4 = vpop.f32.mrf.mxu0 }
 0x1ce   :  { %v1188_v8 = vmul.f32 %v1142_v4, %v341_v43  ;;  %v1206_v43 = vrot.slane %v1205_v39, 2 }
 0x1d0   :  { %v1210_v62 = vsel %vm103_vm0, %v1188_v8, 0.0  ;;  %v2633_v34 = vpop.f32.mrf.mxu2  ;;  %v1207_v36 = vadd.f32 %v1206_v43, %v1205_v39 }
 0x1d1   :  { %v1211_v20 = vrot.slane %v1210_v62, 4 }
 0x1d2   :  { %v1208_v48 = vrot.slane %v1207_v36, 1 }
 0x1d3   :  { %v1212_v21 = vadd.f32 %v1211_v20, %v1210_v62 }
 0x1d5   :  { %v1145_v5 = vpop.f32.mrf.mxu0  ;;  %v1213_v37 = vrot.slane %v1212_v21, 2 }
 0x1d6   :  { %v1189_v12 = vmul.f32 %v1145_v5, %v344_v38 }
 0x1d7   :  { %v1214_v49 = vadd.f32 %v1213_v37, %v1212_v21 }
 0x1d8   :  { %v1217_v44 = vsel %vm103_vm0, %v1189_v12, 0.0  ;;  %v361_v55 = vpop.f32.mrf.mxu2 }
 0x1d9   :  { %v1218_v23 = vrot.slane %v1217_v44, 4  ;;  %v1215_v57 = vrot.slane %v1214_v49, 1 }
 0x1db   :  { %v1219_v32 = vadd.f32 %v1218_v23, %v1217_v44  ;;  %v2637_v4 = vadd.f32 %v1215_v57, %v1214_v49 }
 0x1dd   :  { %v1148_v6 = vpop.f32.mrf.mxu0  ;;  %v1220_v27 = vrot.slane %v1219_v32, 2  ;;  %v1316_v13 = vmul.f32 %v2637_v4, %v2637_v4 }
 0x1de   :  { %v1190_v16 = vmul.f32 %v1148_v6, %v346_v56 }
 0x1df   :  { %v1221_v52 = vadd.f32 %v1220_v27, %v1219_v32 }
 0x1e0   :  { %v1224_v15 = vsel %vm103_vm0, %v1190_v16, 0.0 }
 0x1e1   :  { %v1225_v19 = vrot.slane %v1224_v15, 4  ;;  %v1222_v54 = vrot.slane %v1221_v52, 1 }
 0x1e2   :  { %v364_v18 = vpop.f32.mrf.mxu2 }
 0x1e3   :  { %v1226_v40 = vadd.f32 %v1225_v19, %v1224_v15  ;;  %v2639_v6 = vadd.f32 %v1222_v54, %v1221_v52 }
 0x1e5   :  { %v1227_v45 = vrot.slane %v1226_v40, 2  ;;  %v1317_v62 = vmul.f32 %v2639_v6, %v2639_v6 }
 0x1e7   :  { %v1151_v7 = vpop.f32.mrf.mxu0  ;;  %v1228_v47 = vadd.f32 %v1227_v45, %v1226_v40 }
 0x1e8   :  { %v1191_v17 = vmul.f32 %v1151_v7, %v349_v0 }
 0x1e9   :  { %v1229_v35 = vrot.slane %v1228_v47, 1 }
 0x1ea   :  { %v1231_v22 = vsel %vm103_vm0, %v1191_v17, 0.0 }
 0x1eb   :  { %v1232_v29 = vrot.slane %v1231_v22, 4  ;;  %v2643_v7 = vadd.f32 %v1229_v35, %v1228_v47 }
 0x1ed   :  { %v1233_v33 = vadd.f32 %v1232_v29, %v1231_v22  ;;  %v1318_v20 = vmul.f32 %v2643_v7, %v2643_v7 }
 0x1ef   :  { %v1154_v10 = vpop.f32.mrf.mxu0  ;;  %v1234_v61 = vrot.slane %v1233_v33, 2 }
 0x1f0   :  { %v1192_v14 = vmul.f32 %v1154_v10, %v351_v1 }
 0x1f1   :  { %v1235_v26 = vadd.f32 %v1234_v61, %v1233_v33  ;;  %v366_v33 = vpop.f32.mrf.mxu2 }
 0x1f2   :  { %v1238_v30 = vsel %vm103_vm0, %v1192_v14, 0.0 }
 0x1f3   :  { %v1239_v31 = vrot.slane %v1238_v30, 4  ;;  %v1236_v2 = vrot.slane %v1235_v26, 1 }
 0x1f5   :  { %v1240_v41 = vadd.f32 %v1239_v31, %v1238_v30  ;;  %v2645_v12 = vadd.f32 %v1236_v2, %v1235_v26 }
 0x1f7   :  { %v1157_v58 = vpop.f32.mrf.mxu0  ;;  %v1241_v50 = vrot.slane %v1240_v41, 2  ;;  %v1319_v10 = vmul.f32 %v2645_v12, %v2645_v12 }
 0x1f8   :  { %v1193_v42 = vmul.f32 %v1157_v58, %v354_v11  ;;  %v2641_v11 = vadd.f32 %v1208_v48, %v1207_v36 }
 0x1f9   :  { %v1242_v38 = vadd.f32 %v1241_v50, %v1240_v41  ;;  %v369_v41 = vpop.f32.mrf.mxu2 }
 0x1fa   :  { %v1245_v46 = vsel %vm103_vm0, %v1193_v42, 0.0  ;;  %v1315_v15 = vmul.f32 %v2641_v11, %v2641_v11 }
 0x1fb   :  { %v1246_v51 = vrot.slane %v1245_v46, 4  ;;  %v1243_v5 = vrot.slane %v1242_v38, 1 }
 0x1fc   :  { %v1352_v23 = vsel %vm1351_vm1, %v1316_v13, %v1315_v15 }
 0x1fd   :  { %v1247_v53 = vadd.f32 %v1246_v51, %v1245_v46  ;;  %v2649_v16 = vadd.f32 %v1243_v5, %v1242_v38  ;;  %v1354_v19 = vsel %vm1353_vm10, %v1317_v62, %v1352_v23 }
 0x1fe   :  { %v1356_v30 = vsel %vm1355_vm11, %v1318_v20, %v1354_v19 }
 0x1ff   :  { %v1248_v59 = vrot.slane %v1247_v53, 2  ;;  %v1160_v60 = vpop.f32.mrf.mxu0  ;;  %v1320_v14 = vmul.f32 %v2649_v16, %v2649_v16  ;;  %v1358_v21 = vsel %vm1357_vm12, %v1319_v10, %v1356_v30 }
 0x200   :  { %v1194_v63 = vmul.f32 %v1160_v60, %v356_v3 }
 0x201   :  { %v1249_v56 = vadd.f32 %v1248_v59, %v1247_v53  ;;  %v1360_v32 = vsel %vm1359_vm13, %v1320_v14, %v1358_v21  ;;  %v371_v27 = vpop.f32.mrf.mxu2 }
 0x202   :  { %v1252_v0 = vsel %vm103_vm0, %v1194_v63, 0.0 }
 0x203   :  { %v1253_v1 = vrot.slane %v1252_v0, 4  ;;  %v1250_v9 = vrot.slane %v1249_v56, 1 }
 0x205   :  { %v1254_v8 = vadd.f32 %v1253_v1, %v1252_v0  ;;  %v2653_v44 = vadd.f32 %v1250_v9, %v1249_v56 }
 0x207   :  { %v1255_v3 = vrot.slane %v1254_v8, 2  ;;  %v1163_v17 = vpop.f32.mrf.mxu0  ;;  %v1321_v24 = vmul.f32 %v2653_v44, %v2653_v44 }
 0x208   :  { %v1195_v61 = vmul.f32 %v1163_v17, %v2633_v34 }
 0x209   :  { %v1256_v22 = vadd.f32 %v1255_v3, %v1254_v8  ;;  %v1362_v39 = vsel %vm1361_vm14, %v1321_v24, %v1360_v32  ;;  %v374_v36 = vpop.f32.mrf.mxu2 }
 0x20a   :  { %v1259_v53 = vsel %vm103_vm0, %v1195_v61, 0.0 }
 0x20b   :  { %v1257_v25 = vrot.slane %v1256_v22, 1  ;;  %v1260_v34 = vrot.slane %v1259_v53, 4 }
 0x20d   :  { %v2667_v29 = vadd.f32 %v1257_v25, %v1256_v22  ;;  %v1261_v2 = vadd.f32 %v1260_v34, %v1259_v53 }
 0x20f   :  { %v1166_v31 = vpop.f32.mrf.mxu0  ;;  %v1322_v28 = vmul.f32 %v2667_v29, %v2667_v29 }
 0x210   :  { %v1196_v43 = vmul.f32 %v1166_v31, %v361_v55 }
 0x211   :  { %v1364_v40 = vsel %vm1363_vm15, %v1322_v28, %v1362_v39  ;;  %v376_v13 = vpop.f32.mrf.mxu2 }
 0x212   :  { %2006 = vmatmul.msk.f32.vlgmr.msrb.gmra.mxu1 %vm103_vm0, %v1364_v40  ;;  %v1266_v50 = vsel %vm103_vm0, %v1196_v43, 0.0 }
 0x213   :  { %v1267_v57 = vrot.slane %v1266_v50, 4 }
 0x215   :  { %v1268_v63 = vadd.f32 %v1267_v57, %v1266_v50 }
 0x217   :  { %v1169_v37 = vpop.f32.mrf.mxu0  ;;  %v1269_v9 = vrot.slane %v1268_v63, 2 }
 0x218   :  { %v1197_v45 = vmul.f32 %v1169_v37, %v364_v18  ;;  %v1262_v18 = vrot.slane %v1261_v2, 2 }
 0x219   :  { %v1270_v10 = vadd.f32 %v1269_v9, %v1268_v63 }
 0x21a   :  { %v1273_v52 = vsel %vm103_vm0, %v1197_v45, 0.0  ;;  %v1263_v19 = vadd.f32 %v1262_v18, %v1261_v2 }
 0x21b   :  { %v1274_v55 = vrot.slane %v1273_v52, 4  ;;  %v1271_v21 = vrot.slane %v1270_v10, 1 }
 0x21d   :  { %v1275_v35 = vadd.f32 %v1274_v55, %v1273_v52 }
 0x21f   :  { %v1172_v58 = vpop.f32.mrf.mxu0  ;;  %v1276_v17 = vrot.slane %v1275_v35, 2 }
 0x220   :  { %v1198_v46 = vmul.f32 %v1172_v58, %v366_v33  ;;  %v1264_v33 = vrot.slane %v1263_v19, 1 }
 0x221   :  { %v1277_v14 = vadd.f32 %v1276_v17, %v1275_v35 }
 0x222   :  { %v1280_v26 = vsel %vm103_vm0, %v1198_v46, 0.0  ;;  %v2690_v46 = vadd.f32 %v1264_v33, %v1263_v19 }
 0x223   :  { %v1281_v60 = vrot.slane %v1280_v26, 4  ;;  %v1278_v32 = vrot.slane %v1277_v14, 1 }
 0x224   :  { %v1323_v57 = vmul.f32 %v2690_v46, %v2690_v46 }
 0x225   :  { %v1282_v0 = vadd.f32 %v1281_v60, %v1280_v26  ;;  %v2688_v45 = vadd.f32 %v1278_v32, %v1277_v14 }
 0x227   :  { %v1175_v42 = vpop.f32.mrf.mxu0  ;;  %v1283_v15 = vrot.slane %v1282_v0, 2  ;;  %v1325_v53 = vmul.f32 %v2688_v45, %v2688_v45 }
 0x228   :  { %v1199_v49 = vmul.f32 %v1175_v42, %v369_v41 }
 0x229   :  { %v1284_v24 = vadd.f32 %v1283_v15, %v1282_v0 }
 0x22a   :  { %v1287_v38 = vsel %vm103_vm0, %v1199_v49, 0.0 }
 0x22b   :  { %v1288_v54 = vrot.slane %v1287_v38, 4  ;;  %v1285_v37 = vrot.slane %v1284_v24, 1 }
 0x22d   :  { %v1289_v1 = vadd.f32 %v1288_v54, %v1287_v38  ;;  %v2692_v49 = vadd.f32 %v1285_v37, %v1284_v24 }
 0x22f   :  { %v1178_v51 = vpop.f32.mrf.mxu0  ;;  %v1290_v20 = vrot.slane %v1289_v1, 2  ;;  %v1326_v38 = vmul.f32 %v2692_v49, %v2692_v49 }
 0x230   :  { %v1200_v47 = vmul.f32 %v1178_v51, %v371_v27  ;;  %v2686_v27 = vadd.f32 %v1271_v21, %v1270_v10 }
 0x231   :  { %v1291_v30 = vadd.f32 %v1290_v20, %v1289_v1 }
 0x232   :  { %v1294_v59 = vsel %vm103_vm0, %v1200_v47, 0.0  ;;  %v1324_v52 = vmul.f32 %v2686_v27, %v2686_v27 }
 0x233   :  { %v1295_v48 = vrot.slane %v1294_v59, 4  ;;  %v1292_v41 = vrot.slane %v1291_v30, 1 }
 0x234   :  { %v1365_v34 = vsel %vm1351_vm1, %v1324_v52, %v1323_v57 }
 0x235   :  { %v1296_v8 = vadd.f32 %v1295_v48, %v1294_v59  ;;  %v2694_v51 = vadd.f32 %v1292_v41, %v1291_v30  ;;  %v1366_v48 = vsel %vm1353_vm10, %v1325_v53, %v1365_v34 }
 0x237   :  { %v1181_v56 = vpop.f32.mrf.mxu0  ;;  %v1297_v23 = vrot.slane %v1296_v8, 2  ;;  %v1327_v59 = vmul.f32 %v2694_v51, %v2694_v51 }
 0x238   :  { %v1201_v5 = vmul.f32 %v1181_v56, %v374_v36  ;;  %v1367_v56 = vsel %vm1355_vm11, %v1326_v38, %v1366_v48  ;;  %v2741_v38 = vld [vmem:[%s2861_s13] ss:$0 sm:$0xff] }
 0x239   :  { %v1298_v31 = vadd.f32 %v1297_v23, %v1296_v8  ;;  %v1368_v2 = vsel %vm1357_vm12, %v1327_v59, %v1367_v56  ;;  %v2171_v8 = vmov 8.0  }
 0x23a   :  { %v1301_v3 = vsel %vm103_vm0, %v1201_v5, 0.0  ;;  %2151 = vrcp.f32 %v2171_v8 }
 0x23b   :  { %v1302_v62 = vrot.slane %v1301_v3, 4  ;;  %v1299_v42 = vrot.slane %v1298_v31, 1 }
 0x23d   :  { %v1303_v22 = vadd.f32 %v1302_v62, %v1301_v3  ;;  %v2698_v36 = vadd.f32 %v1299_v42, %v1298_v31  ;;  %v1430_v62 = vld [vmem:[%s2862_s12] sm:$0xf] }
 0x23e   :  { %2008 = vmatpush.msk.msra.mxu2 %vm1438_vm2, %v1430_v62 }
 0x23f   :  { %v1304_v25 = vrot.slane %v1303_v22, 2  ;;  %v1328_v60 = vmul.f32 %v2698_v36, %v2698_v36 }
 0x241   :  { %v1305_v39 = vadd.f32 %v1304_v25, %v1303_v22  ;;  %v1369_v5 = vsel %vm1359_vm13, %v1328_v60, %v1368_v2 }
 0x242   :  { %v1184_v28 = vpop.f32.mrf.mxu2 }
 0x243   :  { %v1202_v40 = vmul.f32 %v1184_v28, %v376_v13  ;;  %v1306_v61 = vrot.slane %v1305_v39, 1  ;;  %v2152_v13 = vpop.eup %2151  ;;  %v2070_v28 = vld [vmem:[%s2863_s6 + $0x8] sm:$0xff] }
 0x244   :  { %v1400_v3 = vmul.f32 8.0, %v2152_v13  ;;  %vm1404_vm3 = vweird.f32 %v2152_v13  ;;  %1639 = vmatpush.bf16.msrb.mxu3 %v2070_v28 }
 0x245   :  { %v1308_v58 = vsel %vm103_vm0, %v1202_v40, 0.0  ;;  %v2702_v26 = vadd.f32 %v1306_v61, %v1305_v39 }
 0x246   :  { %v1309_v43 = vrot.slane %v1308_v58, 4  ;;  %v1401_v17 = vsub.f32 1.0, %v1400_v3 }
 0x247   :  { %v1329_v63 = vmul.f32 %v2702_v26, %v2702_v26 }
 0x248   :  { %v1310_v50 = vadd.f32 %v1309_v43, %v1308_v58  ;;  %v1402_v18 = vmul.f32 %v2152_v13, %v1401_v17 }
 0x249   :  { %v1370_v1 = vsel %vm1361_vm14, %v1329_v63, %v1369_v5 }
 0x24a   :  { %v1311_v47 = vrot.slane %v1310_v50, 2  ;;  %v1403_v15 = vadd.f32 %v2152_v13, %v1402_v18 }
 0x24c   :  { %v1312_v55 = vadd.f32 %v1311_v47, %v1310_v50  ;;  %v1405_v20 = vsel %vm1404_vm3, %v2152_v13, %v1403_v15  ;;  %v2069_v50 = vld [vmem:[%s2863_s6] sm:$0xff]  ;;  %vm1791_vm3 = vcmask 523264  }
 0x24d   :  { %1640 = vmatpush.bf16.msrb.mxu3 %v2069_v50 }
 0x24e   :  { %v1313_v54 = vrot.slane %v1312_v55, 1 }
 0x250   :  { %v2716_v35 = vadd.f32 %v1313_v54, %v1312_v55 }
 0x252   :  { %v1330_v0 = vmul.f32 %v2716_v35, %v2716_v35 }
 0x254   :  { %v1371_v9 = vsel %vm1363_vm15, %v1330_v0, %v1370_v1 }
 0x255   :  { %2007 = vmatmul.msk.f32.gmra.mxu1 %vm103_vm0, %v1371_v9 }
 0x28f   :  { %v1393_v22 = vpop.f32.mrf.mxu1 }
 0x290   :  { %v1406_v10 = vmul.f32 %v1405_v20, %v1393_v22 }
 0x292   :  { %v1408_v23 = vadd.f32 1e-05, %v1406_v10 }
 0x294   :  { %2153 = vrsqrt.f32 %v1408_v23  ;;  %vm1416_vm5 = vweird.f32 %v1408_v23 }
 0x29a   :  { %v2154_v14 = vpop.eup %2153 }
 0x29b   :  { %v1411_v25 = vmul.f32 %v2154_v14, %v1408_v23  ;;  %vm1417_vm4 = vweird.f32 %v2154_v14 }
 0x29c   :  { %vm1418_vm7 = vmor %vm1416_vm5, %vm1417_vm4 }
 0x29d   :  { %v1412_v19 = vmul.f32 %v2154_v14, %v1411_v25 }
 0x29f   :  { %v1413_v24 = vmul.f32 0.5, %v1412_v19 }
 0x2a1   :  { %v1414_v30 = vsub.f32 1.5, %v1413_v24 }
 0x2a3   :  { %v1415_v21 = vmul.f32 %v2154_v14, %v1414_v30 }
 0x2a5   :  { %v1419_v31 = vsel %vm1418_vm7, %v2154_v14, %v1415_v21 }
 0x2a6   :  { %2009 = vmatmul.msk.f32.vlgmr.msra.gmra.mxu2 %vm1431_vm6, %v1419_v31 }
 0x2d2   :  { %v1396_v32 = vpop.f32.mrf.mxu1 }
 0x2d3   :  { %v1407_v39 = vmul.f32 %v1405_v20, %v1396_v32 }
 0x2d5   :  { %v1409_v40 = vadd.f32 1e-05, %v1407_v39 }
 0x2d7   :  { %2155 = vrsqrt.f32 %v1409_v40  ;;  %vm1426_vm9 = vweird.f32 %v1409_v40 }
 0x2dd   :  { %v2156_v33 = vpop.eup %2155 }
 0x2de   :  { %v1421_v37 = vmul.f32 %v2156_v33, %v1409_v40  ;;  %vm1427_vm8 = vweird.f32 %v2156_v33 }
 0x2df   :  { %vm1428_vm2 = vmor %vm1426_vm9, %vm1427_vm8 }
 0x2e0   :  { %v1422_v41 = vmul.f32 %v2156_v33, %v1421_v37 }
 0x2e2   :  { %v1423_v58 = vmul.f32 0.5, %v1422_v41 }
 0x2e4   :  { %v1424_v42 = vsub.f32 1.5, %v1423_v58 }
 0x2e6   :  { %v1425_v43 = vmul.f32 %v2156_v33, %v1424_v42 }
 0x2e8   :  { %v1429_v61 = vsel %vm1428_vm2, %v2156_v33, %v1425_v43 }
 0x2e9   :  { %2010 = vmatmul.msk.f32.gmra.mxu2 %vm1431_vm6, %v1429_v61 }
 0x329   :  { %v1459_v52 = vpop.f32.mrf.mxu2 }
 0x32a   :  { %v1474_v47 = vrot.slane %v1459_v52, 1  ;;  %v1475_v53 = vrot.slane %v1459_v52, 2  ;;  %v1476_v59 = vrot.slane %v1459_v52, 3  ;;  %v1504_v60 = vmul.f32 %v1459_v52, %v2641_v11 }
 0x32b   :  { %v1477_v56 = vrot.slane %v1459_v52, 4  ;;  %v1478_v2 = vrot.slane %v1459_v52, 5  ;;  %v1479_v9 = vrot.slane %v1459_v52, 6  ;;  %v1480_v62 = vrot.slane %v1459_v52, 7 }
 0x32c   :  { %v1505_v57 = vmul.f32 %v1474_v47, %v2637_v4  ;;  %v1506_v55 = vmul.f32 %v1475_v53, %v2639_v6  ;;  %v1507_v63 = vmul.f32 %v1476_v59, %v2643_v7  ;;  %v1521_v4 = vmul.f32 %v2741_v38, %v1504_v60 }
 0x32d   :  { %v1508_v6 = vmul.f32 %v1477_v56, %v2645_v12  ;;  %v1509_v13 = vmul.f32 %v1478_v2, %v2649_v16  ;;  %v1510_v18 = vmul.f32 %v1479_v9, %v2653_v44  ;;  %v1511_v12 = vmul.f32 %v1480_v62, %v2667_v29 }
 0x32e   :  { %v1522_v34 = vmul.f32 %v2741_v38, %v1505_v57  ;;  %v1523_v54 = vmul.f32 %v2741_v38, %v1506_v55  ;;  %v1524_v1 = vmul.f32 %v2741_v38, %v1507_v63  ;;  %v1537_v8 = vpack.c.bf16 %v1521_v4, %v1521_v4 }
 0x32f   :  { %v1525_v15 = vmul.f32 %v2741_v38, %v1508_v6  ;;  %v1526_v20 = vmul.f32 %v2741_v38, %v1509_v13  ;;  %v1527_v14 = vmul.f32 %v2741_v38, %v1510_v18  ;;  %v1528_v30 = vmul.f32 %v2741_v38, %v1511_v12 }
 0x330   :  { %v1538_v48 = vpack.c.bf16 %v1522_v34, %v1522_v34  ;;  %v1539_v0 = vpack.c.bf16 %v1523_v54, %v1523_v54  ;;  %v1540_v17 = vpack.c.bf16 %v1524_v1, %v1524_v1  ;;  %v1573_v7 = vunpack.c.l.b16 %v1537_v8 }
 0x331   :  { %v1541_v16 = vpack.c.bf16 %v1525_v15, %v1525_v15  ;;  %v1542_v25 = vpack.c.bf16 %v1526_v20, %v1526_v20  ;;  %v1543_v21 = vpack.c.bf16 %v1527_v14, %v1527_v14 }
 0x332   :  { %v1574_v5 = vunpack.c.l.b16 %v1538_v48  ;;  %v1575_v11 = vunpack.c.l.b16 %v1539_v0  ;;  %v1576_v10 = vunpack.c.l.b16 %v1540_v17 }
 0x333   :  { %v1577_v31 = vunpack.c.l.b16 %v1541_v16  ;;  %v1578_v28 = vunpack.c.l.b16 %v1542_v25  ;;  %v1579_v9 = vunpack.c.l.b16 %v1543_v21 }
 0x334   :  { %v1589_v3 = vrot.slane %v1574_v5, 7  ;;  %v1591_v22 = vrot.slane %v1575_v11, 6  ;;  %v1593_v24 = vrot.slane %v1576_v10, 5 }
 0x335   :  { %v1595_v2 = vrot.slane %v1577_v31, 4  ;;  %v1597_v13 = vrot.slane %v1578_v28, 3  ;;  %v1599_v10 = vrot.slane %v1579_v9, 2 }
 0x336   :  { %v1590_v23 = vsel %vm1351_vm1, %v1589_v3, %v1573_v7 }
 0x337   :  { %v1592_v19 = vsel %vm1353_vm10, %v1591_v22, %v1590_v23 }
 0x338   :  { %v1594_v32 = vsel %vm1355_vm11, %v1593_v24, %v1592_v19 }
 0x339   :  { %v1596_v8 = vsel %vm1357_vm12, %v1595_v2, %v1594_v32 }
 0x33a   :  { %v1598_v20 = vsel %vm1359_vm13, %v1597_v13, %v1596_v8 }
 0x33b   :  { %v1600_v25 = vsel %vm1361_vm14, %v1599_v10, %v1598_v20 }
 0x36c   :  { %v1462_v44 = vpop.f32.mrf.mxu2 }
 0x36d   :  { %v1481_v39 = vrot.slane %v1462_v44, 1  ;;  %v1482_v40 = vrot.slane %v1462_v44, 2  ;;  %v1483_v33 = vrot.slane %v1462_v44, 3  ;;  %v1484_v37 = vrot.slane %v1462_v44, 4 }
 0x36e   :  { %v1485_v29 = vrot.slane %v1462_v44, 5  ;;  %v1486_v41 = vrot.slane %v1462_v44, 6  ;;  %v1487_v58 = vrot.slane %v1462_v44, 7  ;;  %v1512_v42 = vmul.f32 %v1462_v44, %v2690_v46 }
 0x36f   :  { %v1513_v43 = vmul.f32 %v1481_v39, %v2686_v27  ;;  %v1514_v61 = vmul.f32 %v1482_v40, %v2688_v45  ;;  %v1515_v50 = vmul.f32 %v1483_v33, %v2692_v49  ;;  %v1516_v52 = vmul.f32 %v1484_v37, %v2694_v51 }
 0x370   :  { %v1517_v47 = vmul.f32 %v1485_v29, %v2698_v36  ;;  %v1518_v53 = vmul.f32 %v1486_v41, %v2702_v26  ;;  %v1529_v57 = vmul.f32 %v2741_v38, %v1512_v42  ;;  %v1519_v55 = vmul.f32 %v1487_v58, %v2716_v35 }
 0x371   :  { %v1530_v59 = vmul.f32 %v2741_v38, %v1513_v43  ;;  %v1531_v46 = vmul.f32 %v2741_v38, %v1514_v61  ;;  %v1532_v27 = vmul.f32 %v2741_v38, %v1515_v50  ;;  %v1533_v45 = vmul.f32 %v2741_v38, %v1516_v52  ;;  %v2072_v43 = vld [vmem:[%s2864_s7 + $0x8] sm:$0xff]  ;;  %v2071_v50 = vld [vmem:[%s2864_s7] sm:$0xff] }
 0x372   :  { %v1545_v34 = vpack.c.bf16 %v1529_v57, %v1529_v57  ;;  %v1534_v49 = vmul.f32 %v2741_v38, %v1517_v47  ;;  %v1535_v51 = vmul.f32 %v2741_v38, %v1518_v53  ;;  %v1536_v36 = vmul.f32 %v2741_v38, %v1519_v55  ;;  %1731 = vmatpush.bf16.msra.mxu0 %v2072_v43 }
 0x373   :  { %v1546_v26 = vpack.c.bf16 %v1530_v59, %v1530_v59  ;;  %v1547_v60 = vpack.c.bf16 %v1531_v46, %v1531_v46  ;;  %v1548_v54 = vpack.c.bf16 %v1532_v27, %v1532_v27  ;;  %v1549_v63 = vpack.c.bf16 %v1533_v45, %v1533_v45 }
 0x374   :  { %v1544_v35 = vpack.c.bf16 %v1528_v30, %v1528_v30  ;;  %v1550_v48 = vpack.c.bf16 %v1534_v49, %v1534_v49  ;;  %v1551_v56 = vpack.c.bf16 %v1535_v51, %v1535_v51  ;;  %v1552_v1 = vpack.c.bf16 %v1536_v36, %v1536_v36 }
 0x375   :  { %v1582_v4 = vunpack.c.l.b16 %v1546_v26  ;;  %v1583_v0 = vunpack.c.l.b16 %v1547_v60  ;;  %v1584_v5 = vunpack.c.l.b16 %v1548_v54  ;;  %v1585_v6 = vunpack.c.l.b16 %v1549_v63 }
 0x376   :  { %v1581_v11 = vunpack.c.l.b16 %v1545_v34  ;;  %v1586_v17 = vunpack.c.l.b16 %v1550_v48  ;;  %v1580_v62 = vunpack.c.l.b16 %v1544_v35  ;;  %v1587_v7 = vunpack.c.l.b16 %v1551_v56  ;;  %1732 = vmatpush.bf16.msra.mxu0 %v2071_v50 }
 0x377   :  { %v1603_v3 = vrot.slane %v1582_v4, 7  ;;  %v1605_v38 = vrot.slane %v1583_v0, 6  ;;  %v1607_v18 = vrot.slane %v1584_v5, 5  ;;  %v1588_v15 = vunpack.c.l.b16 %v1552_v1 }
 0x378   :  { %v1609_v12 = vrot.slane %v1585_v6, 4  ;;  %v1611_v16 = vrot.slane %v1586_v17, 3  ;;  %v1613_v24 = vrot.slane %v1587_v7, 2  ;;  %v1601_v30 = vrot.slane %v1580_v62, 1 }
 0x379   :  { %v1604_v22 = vsel %vm1351_vm1, %v1603_v3, %v1581_v11  ;;  %v1615_v21 = vrot.slane %v1588_v15, 1  ;;  %v2172_v41 = vmov 32.0  }
 0x37a   :  { %v1606_v23 = vsel %vm1353_vm10, %v1605_v38, %v1604_v22  ;;  %v1602_v28 = vsel %vm1363_vm15, %v1601_v30, %v1600_v25  ;;  %2157 = vrcp.f32 %v2172_v41  ;;  %v2081_v38 = vld [vmem:[%s2861_s13 + $0x1] ss:$0 sm:$0xff]  ;;  %v2083_v25 = vld [vmem:[%s2861_s13 + $0x3] ss:$0 sm:$0xff] }
 0x37b   :  { %v1608_v14 = vsel %vm1355_vm11, %v1607_v18, %v1606_v23  ;;  %v2082_v18 = vld [vmem:[%s2861_s13 + $0x2] ss:$0 sm:$0xff] }
 0x37c   :  { %v1610_v19 = vsel %vm1357_vm12, %v1609_v12, %v1608_v14  ;;  %v2076_v14 = vld [vmem:[%s2865_s8 + $0x18] sm:$0xff] }
 0x37d   :  { %v1612_v44 = vsel %vm1359_vm13, %v1611_v16, %v1610_v19  ;;  %1799 = vmatpush.bf16.msra.mxu1 %v2076_v14  ;;  %v2075_v16 = vld [vmem:[%s2865_s8 + $0x10] sm:$0xff]  ;;  %v2074_v19 = vld [vmem:[%s2865_s8 + $0x8] sm:$0xff] }
 0x37e   :  { %v1614_v31 = vsel %vm1361_vm14, %v1613_v24, %v1612_v44  ;;  %v2073_v44 = vld [vmem:[%s2865_s8] sm:$0xff] }
 0x37f   :  { %v1616_v32 = vsel %vm1363_vm15, %v1615_v21, %v1614_v31 }
 0x380   :  { %v1617_v39 = vpack.c.b16 %v1616_v32, %v1602_v28  ;;  %v2158_v58 = vpop.eup %2157 }
 0x381   :  { %v1654_v42 = vmul.f32 32.0, %v2158_v58  ;;  %vm1658_vm1 = vweird.f32 %v2158_v58  ;;  %1800 = vmatpush.bf16.msra.mxu1 %v2075_v16 }
 0x382   :  { %2019 = vmatmul.msk.bf16.vlgmr.msrb.gmra.mxu3 %vm103_vm0, %v1617_v39 }
 0x383   :  { %v1655_v61 = vsub.f32 1.0, %v1654_v42 }
 0x385   :  { %v1656_v52 = vmul.f32 %v2158_v58, %v1655_v61  ;;  %1801 = vmatpush.bf16.msra.mxu1 %v2074_v19 }
 0x387   :  { %v1657_v47 = vadd.f32 %v2158_v58, %v1656_v52 }
 0x389   :  { %v2797_v53 = vsel %vm1658_vm1, %v2158_v58, %v1657_v47  ;;  %1802 = vmatpush.bf16.msra.mxu1 %v2073_v44 }
 0x405   :  { %v1642_v40 = vpop.f32.mrf.mxu3 }
 0x406   :  { %v1647_v33 = vsel %vm103_vm0, %v1642_v40, 0.0 }
 0x407   :  { %1648 = vadd.xlane.f32.xlu0 %v1647_v33 }
 0x40d   :  { %v1644_v37 = vpop.f32.mrf.mxu3 }
 0x40e   :  { %v1650_v29 = vsel %vm103_vm0, %v1644_v37, 0.0 }
 0x40f   :  { %1651 = vadd.xlane.f32.xlu0 %v1650_v29 }
 0x47a   :  { %v1649_v57 = vpop.xlane.xlu0 %1648 }
 0x47b   :  { %v1660_v55 = vmul.f32 %v2797_v53, %v1649_v57 }
 0x47d   :  { %v1662_v59 = vsub.f32 %v1642_v40, %v1660_v55 }
 0x47f   :  { %v1664_v46 = vmul.f32 %v1662_v59, %v1662_v59 }
 0x481   :  { %v1666_v27 = vsel %vm103_vm0, %v1664_v46, 0.0 }
 0x482   :  { %1667 = vadd.xlane.f32.xlu1 %v1666_v27  ;;  %v1652_v45 = vpop.xlane.xlu0 %1651  ;;  %v2084_v27 = vld [vmem:[%s2861_s13 + $0x4] ss:$0 sm:$0xff] }
 0x483   :  { %v1661_v34 = vmul.f32 %v2797_v53, %v1652_v45 }
 0x485   :  { %v1663_v49 = vsub.f32 %v1644_v37, %v1661_v34 }
 0x487   :  { %v1665_v51 = vmul.f32 %v1663_v49, %v1663_v49 }
 0x489   :  { %v1669_v36 = vsel %vm103_vm0, %v1665_v51, 0.0 }
 0x48a   :  { %1670 = vadd.xlane.f32.xlu1 %v1669_v36 }
 0x4f5   :  { %v1668_v26 = vpop.xlane.xlu1 %1667 }
 0x4f6   :  { %v1672_v60 = vmul.f32 %v1668_v26, %v2797_v53 }
 0x4f8   :  { %v1674_v54 = vadd.f32 1e-05, %v1672_v60 }
 0x4fa   :  { %2159 = vrsqrt.f32 %v1674_v54  ;;  %vm1682_vm11 = vweird.f32 %v1674_v54 }
 0x4fd   :  { %v1671_v63 = vpop.xlane.xlu1 %1670 }
 0x4fe   :  { %v1673_v35 = vmul.f32 %v1671_v63, %v2797_v53 }
 0x500   :  { %v2160_v48 = vpop.eup %2159  ;;  %v1675_v56 = vadd.f32 1e-05, %v1673_v35 }
 0x501   :  { %v1677_v2 = vmul.f32 %v2160_v48, %v1674_v54  ;;  %vm1683_vm10 = vweird.f32 %v2160_v48 }
 0x502   :  { %2161 = vrsqrt.f32 %v1675_v56  ;;  %vm1684_vm12 = vmor %vm1682_vm11, %vm1683_vm10  ;;  %vm1692_vm14 = vweird.f32 %v1675_v56 }
 0x503   :  { %v1678_v4 = vmul.f32 %v2160_v48, %v1677_v2 }
 0x505   :  { %v1679_v0 = vmul.f32 0.5, %v1678_v4 }
 0x507   :  { %v1680_v5 = vsub.f32 1.5, %v1679_v0 }
 0x508   :  { %v2162_v1 = vpop.eup %2161 }
 0x509   :  { %v1681_v9 = vmul.f32 %v2160_v48, %v1680_v5  ;;  %v1687_v6 = vmul.f32 %v2162_v1, %v1675_v56  ;;  %vm1693_vm13 = vweird.f32 %v2162_v1 }
 0x50a   :  { %vm1694_vm15 = vmor %vm1692_vm14, %vm1693_vm13 }
 0x50b   :  { %v1688_v8 = vmul.f32 %v2162_v1, %v1687_v6  ;;  %v1685_v13 = vsel %vm1684_vm12, %v2160_v48, %v1681_v9 }
 0x50c   :  { %v1696_v17 = vmul.f32 %v1685_v13, %v1662_v59 }
 0x50d   :  { %v1689_v11 = vmul.f32 0.5, %v1688_v8 }
 0x50e   :  { %v1699_v15 = vmul.f32 %v2081_v38, %v1696_v17 }
 0x50f   :  { %v1690_v3 = vsub.f32 1.5, %v1689_v11 }
 0x510   :  { %v1702_v10 = vadd.f32 %v2082_v18, %v1699_v15 }
 0x511   :  { %v1691_v62 = vmul.f32 %v2162_v1, %v1690_v3 }
 0x513   :  { %v1695_v7 = vsel %vm1694_vm15, %v2162_v1, %v1691_v62 }
 0x514   :  { %v1697_v20 = vmul.f32 %v1695_v7, %v1663_v49 }
 0x516   :  { %v1700_v22 = vmul.f32 %v2081_v38, %v1697_v20 }
 0x518   :  { %v1703_v23 = vadd.f32 %v2082_v18, %v1700_v22  ;;  %v2085_v22 = vld [vmem:[%s2861_s13 + $0x5] ss:$0 sm:$0xff] }
 0x51a   :  { %v1704_v12 = vpack.c.bf16 %v1703_v23, %v1702_v10 }
 0x51c   :  { %2028 = vmatmul.msk.bf16.vlgmr.msra.gmra.mxu0 %vm103_vm0, %v1704_v12 }
 0x599   :  { %v1734_v24 = vpop.f32.mrf.mxu0 }
 0x59a   :  { %v1735_v30 = vadd.f32 %v2083_v25, %v1734_v24 }
 0x59c   :  { %v1741_v21 = vmul.f32 0.044715, %v1735_v30  ;;  %v1739_v52 = vmul.f32 0.5, %v1735_v30 }
 0x59e   :  { %v1743_v31 = vmul.f32 %v1741_v21, %v1735_v30 }
 0x5a0   :  { %v1745_v28 = vmul.f32 %v1743_v31, %v1735_v30 }
 0x5a1   :  { %v1736_v32 = vpop.f32.mrf.mxu0 }
 0x5a2   :  { %v1747_v39 = vadd.f32 %v1745_v28, %v1735_v30  ;;  %v1737_v40 = vadd.f32 %v2083_v25, %v1736_v32 }
 0x5a4   :  { %v1742_v33 = vmul.f32 0.044715, %v1737_v40  ;;  %v1749_v37 = vmul.f32 0.7978846, %v1747_v39  ;;  %v1740_v47 = vmul.f32 0.5, %v1737_v40 }
 0x5a6   :  { %v1744_v29 = vmul.f32 %v1742_v33, %v1737_v40  ;;  %2163 = vtanh.f32 %v1749_v37 }
 0x5a8   :  { %v1746_v41 = vmul.f32 %v1744_v29, %v1737_v40 }
 0x5aa   :  { %v1748_v58 = vadd.f32 %v1746_v41, %v1737_v40 }
 0x5ac   :  { %v1750_v42 = vmul.f32 0.7978846, %v1748_v58  ;;  %v2164_v43 = vpop.eup %2163 }
 0x5ad   :  { %v1753_v61 = vadd.f32 1.0, %v2164_v43 }
 0x5ae   :  { %2165 = vtanh.f32 %v1750_v42 }
 0x5af   :  { %v1755_v55 = vmul.f32 %v1753_v61, %v1739_v52 }
 0x5b4   :  { %v2166_v50 = vpop.eup %2165 }
 0x5b5   :  { %v1754_v57 = vadd.f32 1.0, %v2166_v50 }
 0x5b7   :  { %v1756_v59 = vmul.f32 %v1754_v57, %v1740_v47 }
 0x5b9   :  { %v1757_v46 = vpack.c.bf16 %v1756_v59, %v1755_v55 }
 0x5bb   :  { %2045 = vmatmul.msk.bf16.vlgmr.msra.gmra.mxu1 %vm1791_vm3, %v1757_v46 }
 0x638   :  { %v1804_v45 = vpop.f32.mrf.mxu1 }
 0x639   :  { %v1805_v34 = vadd.f32 %v2084_v27, %v1804_v45 }
 0x63b   :  { %v1809_v49 = vsel %vm103_vm0, %v1805_v34, 0.0 }
 0x63c   :  { %1810 = vadd.xlane.f32.xlu2 %v1809_v49 }
 0x640   :  { %v1806_v51 = vpop.f32.mrf.mxu1 }
 0x641   :  { %v1807_v36 = vadd.f32 %v2084_v27, %v1806_v51 }
 0x643   :  { %v1812_v26 = vsel %vm103_vm0, %v1807_v36, 0.0 }
 0x644   :  { %1813 = vadd.xlane.f32.xlu2 %v1812_v26 }
 0x6af   :  { %v1811_v60 = vpop.xlane.xlu2 %1810 }
 0x6b0   :  { %v1815_v54 = vmul.f32 %v1811_v60, %v2797_v53 }
 0x6b2   :  { %v1817_v63 = vsub.f32 %v1805_v34, %v1815_v54 }
 0x6b4   :  { %v1819_v35 = vmul.f32 %v1817_v63, %v1817_v63 }
 0x6b6   :  { %v1821_v48 = vsel %vm103_vm0, %v1819_v35, 0.0 }
 0x6b7   :  { %1822 = vadd.xlane.f32.xlu0 %v1821_v48  ;;  %v1814_v56 = vpop.xlane.xlu2 %1813 }
 0x6b8   :  { %v1816_v2 = vmul.f32 %v1814_v56, %v2797_v53 }
 0x6ba   :  { %v1818_v4 = vsub.f32 %v1807_v36, %v1816_v2 }
 0x6bc   :  { %v1820_v0 = vmul.f32 %v1818_v4, %v1818_v4 }
 0x6be   :  { %v1824_v5 = vsel %vm103_vm0, %v1820_v0, 0.0 }
 0x6bf   :  { %1825 = vadd.xlane.f32.xlu1 %v1824_v5 }
 0x72a   :  { %v1823_v1 = vpop.xlane.xlu0 %1822 }
 0x72b   :  { %v1827_v9 = vmul.f32 %v1823_v1, %v2797_v53 }
 0x72d   :  { %v1829_v6 = vadd.f32 1e-05, %v1827_v9 }
 0x72f   :  { %2167 = vrsqrt.f32 %v1829_v6  ;;  %vm1837_vm5 = vweird.f32 %v1829_v6 }
 0x732   :  { %v1826_v8 = vpop.xlane.xlu1 %1825 }
 0x733   :  { %v1828_v13 = vmul.f32 %v1826_v8, %v2797_v53  ;;  %v2086_v53 = vld [vmem:[%s2861_s13 + $0x6] ss:$0 sm:$0xff] }
 0x735   :  { %v2168_v11 = vpop.eup %2167  ;;  %v1830_v3 = vadd.f32 1e-05, %v1828_v13 }
 0x736   :  { %v1832_v38 = vmul.f32 %v2168_v11, %v1829_v6  ;;  %vm1838_vm4 = vweird.f32 %v2168_v11 }
 0x737   :  { %2169 = vrsqrt.f32 %v1830_v3  ;;  %vm1839_vm6 = vmor %vm1837_vm5, %vm1838_vm4  ;;  %vm1847_vm8 = vweird.f32 %v1830_v3 }
 0x738   :  { %v1833_v17 = vmul.f32 %v2168_v11, %v1832_v38 }
 0x73a   :  { %v1834_v62 = vmul.f32 0.5, %v1833_v17 }
 0x73c   :  { %v1835_v7 = vsub.f32 1.5, %v1834_v62 }
 0x73d   :  { %v2170_v18 = vpop.eup %2169 }
 0x73e   :  { %v1836_v15 = vmul.f32 %v2168_v11, %v1835_v7  ;;  %v1842_v20 = vmul.f32 %v2170_v18, %v1830_v3  ;;  %vm1848_vm7 = vweird.f32 %v2170_v18 }
 0x73f   :  { %vm1849_vm9 = vmor %vm1847_vm8, %vm1848_vm7 }
 0x740   :  { %v1840_v10 = vsel %vm1839_vm6, %v2168_v11, %v1836_v15  ;;  %v1843_v23 = vmul.f32 %v2170_v18, %v1842_v20 }
 0x741   :  { %v1851_v12 = vmul.f32 %v1840_v10, %v1817_v63 }
 0x742   :  { %v1844_v14 = vmul.f32 0.5, %v1843_v23 }
 0x743   :  { %v1854_v16 = vmul.f32 %v2085_v22, %v1851_v12 }
 0x744   :  { %v1845_v25 = vsub.f32 1.5, %v1844_v14 }
 0x745   :  { %v1857_v19 = vadd.f32 %v2086_v53, %v1854_v16 }
 0x746   :  { %v1846_v24 = vmul.f32 %v2170_v18, %v1845_v25 }
 0x747   :  { %1859 = vst.msk [vmem:[%s2866_s14] sm:$0xff] %vm103_vm0, %v1857_v19 }
 0x748   :  { %v1850_v30 = vsel %vm1849_vm9, %v2170_v18, %v1846_v24 }
 0x749   :  { %v1852_v44 = vmul.f32 %v1850_v30, %v1818_v4 }
 0x74b   :  { %v1855_v21 = vmul.f32 %v2085_v22, %v1852_v44 }
 0x74d   :  { %v1858_v31 = vadd.f32 %v2086_v53, %v1855_v21 }
 0x74f   :  { %1860 = vst.msk [vmem:[%s2866_s14 + $0x8] sm:$0xff] %vm103_vm0, %v1858_v31 }

</bundles_post_ra>
